<compile_context>
chip_gen: v7x
topology: tpu7x:2x2x1
jax: 0.10.0
libtpu: 0.0.40
codegen_flags: <defaults>
</compile_context>

<pallas_src>
import jax
import jax.numpy as jnp
from jax.experimental import pallas as pl
from jax.experimental.pallas import tpu as pltpu

# Small, TPU-friendly shapes consistent with the module
# (scaled down from embed_dim=300 / feature_dim=1024 / batch=16).
B = 8      # batch
E = 256    # embed_dim   (LSTMCell input size)
H = 256    # hidden_dim  (== feature_dim in the module)
T = 8      # number of fused encoder steps


def lstm_seq_kernel(x_ref, h0_ref, c0_ref, w_ref, b_ref,
                    h_seq_ref, h_out_ref, c_out_ref,
                    h_scr, c_scr):
    """One LSTMCell step per grid iteration; (h, c) carried in VMEM scratch."""
    t = pl.program_id(0)

    @pl.when(t == 0)
    def _():
        h_scr[...] = h0_ref[...]
        c_scr[...] = c0_ref[...]

    x = x_ref[...]            # (B, E) f32 — streamed per step
    h = h_scr[...]            # (B, H) f32 — resident state
    c = c_scr[...]            # (B, H) f32 — resident state

    # Single K-concatenated MXU matmul: cat([x, h]) @ W, bf16 operands,
    # f32 accumulation.
    xh = jnp.concatenate([x, h], axis=-1).astype(jnp.bfloat16)      # (B, E+H)
    gates = jnp.dot(xh, w_ref[...],
                    preferred_element_type=jnp.float32) + b_ref[...]  # (B, 4H)

    # PyTorch LSTMCell gate order: i, f, g, o
    i_g = jax.nn.sigmoid(gates[:, 0:H])
    f_g = jax.nn.sigmoid(gates[:, H:2 * H])
    g_g = jnp.tanh(gates[:, 2 * H:3 * H])
    o_g = jax.nn.sigmoid(gates[:, 3 * H:4 * H])

    c_new = f_g * c + i_g * g_g
    h_new = o_g * jnp.tanh(c_new)

    h_scr[...] = h_new
    c_scr[...] = c_new
    h_seq_ref[...] = h_new

    @pl.when(t == pl.num_programs(0) - 1)
    def _():
        h_out_ref[...] = h_new
        c_out_ref[...] = c_new


def pack_lstm_params(params):
    """One-time packing of PyTorch-layout weights into kernel layout."""
    w_ih = params["w_ih"]                                        # (4H, E)
    w_hh = params["w_hh"]                                        # (4H, H)
    w = jnp.concatenate([w_ih.T, w_hh.T], axis=0).astype(jnp.bfloat16)  # (E+H, 4H)
    b = (params["b_ih"] + params["b_hh"]).astype(jnp.float32).reshape(1, -1)
    return {"w": w, "b": b}


def sentence_encoder_sequence(sentence_seq, h0, c0, packed):
    """Fused T-step LSTMCell.  Returns (h at every step, (final h, final c))."""
    T_, B_, E_ = sentence_seq.shape
    H_ = h0.shape[-1]

    kernel = pl.pallas_call(
        lstm_seq_kernel,
        out_shape=(
            jax.ShapeDtypeStruct((T_, B_, H_), jnp.float32),   # h at every step
            jax.ShapeDtypeStruct((B_, H_), jnp.float32),       # final h
            jax.ShapeDtypeStruct((B_, H_), jnp.float32),       # final c
        ),
        grid=(T_,),
        in_specs=[
            pl.BlockSpec((None, B_, E_), lambda t: (t, 0, 0)),    # x_t streamed
            pl.BlockSpec((B_, H_), lambda t: (0, 0)),             # h0 (loaded once)
            pl.BlockSpec((B_, H_), lambda t: (0, 0)),             # c0 (loaded once)
            pl.BlockSpec((E_ + H_, 4 * H_), lambda t: (0, 0)),    # weights resident
            pl.BlockSpec((1, 4 * H_), lambda t: (0, 0)),          # bias resident
        ],
        out_specs=(
            pl.BlockSpec((None, B_, H_), lambda t: (t, 0, 0)),
            pl.BlockSpec((B_, H_), lambda t: (0, 0)),
            pl.BlockSpec((B_, H_), lambda t: (0, 0)),
        ),
        scratch_shapes=[pltpu.VMEM((B_, H_), jnp.float32),        # h state
                        pltpu.VMEM((B_, H_), jnp.float32)],       # c state
        compiler_params=pltpu.CompilerParams(
            dimension_semantics=("arbitrary",)),                  # recurrent axis
    )
    h_seq, h_T, c_T = kernel(sentence_seq.astype(jnp.float32),
                             h0.astype(jnp.float32),
                             c0.astype(jnp.float32),
                             packed["w"], packed["b"])
    return h_seq, (h_T, c_T)


def sentence_encoder_forward(sentence, h, c, packed):
    """Single-step forward(sentence, h, c) -> (h, c), matching the module."""
    _, (h_new, c_new) = sentence_encoder_sequence(sentence[None], h, c, packed)
    return h_new, c_new


def reference_sequence(sentence_seq, h0, c0, params):
    """Plain-JAX f32 replica of the PyTorch LSTMCell applied over T steps."""
    def cell(x, h, c):
        gates = (x @ params["w_ih"].T + params["b_ih"]
                 + h @ params["w_hh"].T + params["b_hh"])
        i, f, g, o = jnp.split(gates, 4, axis=1)
        c_new = jax.nn.sigmoid(f) * c + jax.nn.sigmoid(i) * jnp.tanh(g)
        h_new = jax.nn.sigmoid(o) * jnp.tanh(c_new)
        return h_new, c_new

    hs = []
    h, c = h0, c0
    for t in range(sentence_seq.shape[0]):
        h, c = cell(sentence_seq[t], h, c)
        hs.append(h)
    return jnp.stack(hs, axis=0), (h, c)


if __name__ == "__main__":
    key = jax.random.PRNGKey(0)
    k_wih, k_whh, k_bih, k_bhh, k_x = jax.random.split(key, 5)
    s = 0.05
    params = {
        "w_ih": jax.random.normal(k_wih, (4 * H, E), jnp.float32) * s,
        "w_hh": jax.random.normal(k_whh, (4 * H, H), jnp.float32) * s,
        "b_ih": jax.random.normal(k_bih, (4 * H,), jnp.float32) * s,
        "b_hh": jax.random.normal(k_bhh, (4 * H,), jnp.float32) * s,
    }
    packed = pack_lstm_params(params)   # one-time weight packing (bf16)

    sentence_seq = jax.random.normal(k_x, (T, B, E), jnp.float32)
    # init_hc(batch_size): zero initial state.
    h0 = jnp.zeros((B, H), jnp.float32)
    c0 = jnp.zeros((B, H), jnp.float32)

    # Fused multi-step encode.
    h_seq, (h_T, c_T) = sentence_encoder_sequence(sentence_seq, h0, c0, packed)
    jax.block_until_ready((h_seq, h_T, c_T))

    # Single-step call matching the module's forward(sentence, h, c).
    h1, c1 = sentence_encoder_forward(sentence_seq[0], h0, c0, packed)
    jax.block_until_ready((h1, c1))

    # f32 references.
    h_seq_ref, (h_T_ref, c_T_ref) = reference_sequence(sentence_seq, h0, c0, params)
    _, (h1_ref, c1_ref) = reference_sequence(sentence_seq[:1], h0, c0, params)

    # bf16 matmul operands (f32 accumulation) -> slightly looser tolerance.
    tol = dict(atol=2e-2, rtol=2e-2)
    ok = True
    ok &= bool(jnp.allclose(h_seq, h_seq_ref, **tol))
    ok &= bool(jnp.allclose(h_T, h_T_ref, **tol))
    ok &= bool(jnp.allclose(c_T, c_T_ref, **tol))
    ok &= bool(jnp.allclose(h1, h1_ref, **tol))
    ok &= bool(jnp.allclose(c1, c1_ref, **tol))

    if not ok:
        raise SystemExit("mismatch vs reference")
    print("KERNEL_OK")
</pallas_src>

<mosaic_0001>
module attributes {stable_mosaic.version = 11 : i64} {
  func.func @lstm_seq_kernel(%arg0: i32, %arg1: memref<1x8x256xf32, #tpu.memory_space<vmem>>, %arg2: memref<8x256xf32, #tpu.memory_space<vmem>>, %arg3: memref<8x256xf32, #tpu.memory_space<vmem>>, %arg4: memref<512x1024xbf16, #tpu.memory_space<vmem>>, %arg5: memref<1x1024xf32, #tpu.memory_space<vmem>>, %arg6: memref<1x8x256xf32, #tpu.memory_space<vmem>>, %arg7: memref<8x256xf32, #tpu.memory_space<vmem>>, %arg8: memref<8x256xf32, #tpu.memory_space<vmem>>, %arg9: memref<8x256xf32, #tpu.memory_space<vmem>>, %arg10: memref<8x256xf32, #tpu.memory_space<vmem>>) attributes {dimension_semantics = [#tpu.dimension_semantics<arbitrary>], iteration_bounds = array<i64: 8>, scalar_prefetch = 0 : i64, scratch_operands = 2 : i64, tpu.core_type = #tpu.core_type<tc>, window_params = [{transform_indices = @transform_0, window_bounds = array<i64: 1, 8, 256>}, {pipeline_mode = #tpu.pipeline_mode<synchronous>, transform_indices = @transform_1, window_bounds = array<i64: 8, 256>}, {pipeline_mode = #tpu.pipeline_mode<synchronous>, transform_indices = @transform_2, window_bounds = array<i64: 8, 256>}, {pipeline_mode = #tpu.pipeline_mode<synchronous>, transform_indices = @transform_3, window_bounds = array<i64: 512, 1024>}, {pipeline_mode = #tpu.pipeline_mode<synchronous>, transform_indices = @transform_4, window_bounds = array<i64: 1, 1024>}, {transform_indices = @transform_5, window_bounds = array<i64: 1, 8, 256>}, {pipeline_mode = #tpu.pipeline_mode<synchronous>, transform_indices = @transform_6, window_bounds = array<i64: 8, 256>}, {pipeline_mode = #tpu.pipeline_mode<synchronous>, transform_indices = @transform_7, window_bounds = array<i64: 8, 256>}]} {
    %c0_i32 = arith.constant 0 : i32
    %0 = arith.cmpi eq, %arg0, %c0_i32 : i32
    %1 = arith.extui %0 : i1 to i32
    %c0_i32_0 = arith.constant 0 : i32
    %2 = arith.cmpi ne, %1, %c0_i32_0 : i32
    scf.if %2 {
      %c0_22 = arith.constant 0 : index
      %c0_23 = arith.constant 0 : index
      %47 = vector.load %arg2[%c0_22, %c0_23] : memref<8x256xf32, #tpu.memory_space<vmem>>, vector<8x256xf32>
      %c0_24 = arith.constant 0 : index
      %c0_25 = arith.constant 0 : index
      %48 = vector.load %arg9[%c0_24, %c0_25] : memref<8x256xf32, #tpu.memory_space<vmem>>, vector<8x256xf32>
      tpu.vector_store %arg9[%c0_24, %c0_25], %47 {strides = array<i32>} : memref<8x256xf32, #tpu.memory_space<vmem>>, vector<8x256xf32>,
      %c0_26 = arith.constant 0 : index
      %c0_27 = arith.constant 0 : index
      %49 = vector.load %arg3[%c0_26, %c0_27] : memref<8x256xf32, #tpu.memory_space<vmem>>, vector<8x256xf32>
      %c0_28 = arith.constant 0 : index
      %c0_29 = arith.constant 0 : index
      %50 = vector.load %arg10[%c0_28, %c0_29] : memref<8x256xf32, #tpu.memory_space<vmem>>, vector<8x256xf32>
      tpu.vector_store %arg10[%c0_28, %c0_29], %49 {strides = array<i32>} : memref<8x256xf32, #tpu.memory_space<vmem>>, vector<8x256xf32>,
    } else {
    }
    %c0 = arith.constant 0 : index
    %c0_1 = arith.constant 0 : index
    %c0_2 = arith.constant 0 : index
    %3 = vector.load %arg1[%c0, %c0_1, %c0_2] : memref<1x8x256xf32, #tpu.memory_space<vmem>>, vector<1x8x256xf32>
    %4 = vector.shape_cast %3 : vector<1x8x256xf32> to vector<8x256xf32>
    %c0_3 = arith.constant 0 : index
    %c0_4 = arith.constant 0 : index
    %5 = vector.load %arg9[%c0_3, %c0_4] : memref<8x256xf32, #tpu.memory_space<vmem>>, vector<8x256xf32>
    %c0_5 = arith.constant 0 : index
    %c0_6 = arith.constant 0 : index
    %6 = vector.load %arg10[%c0_5, %c0_6] : memref<8x256xf32, #tpu.memory_space<vmem>>, vector<8x256xf32>
    %7 = tpu.concatenate %4, %5 in 1 : vector<8x256xf32>, vector<8x256xf32> -> vector<8x512xf32>
    %8 = arith.truncf %7 : vector<8x512xf32> to vector<8x512xbf16>
    %c0_7 = arith.constant 0 : index
    %c0_8 = arith.constant 0 : index
    %9 = vector.load %arg4[%c0_7, %c0_8] : memref<512x1024xbf16, #tpu.memory_space<vmem>>, vector<512x1024xbf16>
    %cst = arith.constant dense<0.000000e+00> : vector<8x1024xf32>
    %10 = tpu.matmul %8, %9, %cst {dimension_numbers = #tpu.dot_dimension_numbers<[1], [0], [0], [1], [0, 0, 1, 1], [], []>} : vector<8x512xbf16>, vector<512x1024xbf16>, vector<8x1024xf32> -> vector<8x1024xf32>
    %c0_9 = arith.constant 0 : index
    %c0_10 = arith.constant 0 : index
    %11 = vector.load %arg5[%c0_9, %c0_10] : memref<1x1024xf32, #tpu.memory_space<vmem>>, vector<1x1024xf32>
    %12 = vector.broadcast %11 : vector<1x1024xf32> to vector<8x1024xf32>
    %13 = arith.addf %10, %12 : vector<8x1024xf32>
    %14 = vector.extract_strided_slice %13 {offsets = [0, 0], sizes = [8, 256], strides = [1, 1]} : vector<8x1024xf32> to vector<8x256xf32>
    %15 = arith.negf %14 : vector<8x256xf32>
    %16 = math.exp %15 : vector<8x256xf32>
    %cst_11 = arith.constant 1.000000e+00 : f32
    %17 = vector.broadcast %cst_11 : f32 to vector<8x256xf32>
    %18 = arith.addf %17, %16 : vector<8x256xf32>
    %19 = arith.divf %17, %18 : vector<8x256xf32>
    %20 = vector.extract_strided_slice %13 {offsets = [0, 256], sizes = [8, 256], strides = [1, 1]} : vector<8x1024xf32> to vector<8x256xf32>
    %21 = arith.negf %20 : vector<8x256xf32>
    %22 = math.exp %21 : vector<8x256xf32>
    %cst_12 = arith.constant 1.000000e+00 : f32
    %23 = vector.broadcast %cst_12 : f32 to vector<8x256xf32>
    %24 = arith.addf %23, %22 : vector<8x256xf32>
    %25 = arith.divf %23, %24 : vector<8x256xf32>
    %26 = vector.extract_strided_slice %13 {offsets = [0, 512], sizes = [8, 256], strides = [1, 1]} : vector<8x1024xf32> to vector<8x256xf32>
    %27 = math.tanh %26 : vector<8x256xf32>
    %28 = vector.extract_strided_slice %13 {offsets = [0, 768], sizes = [8, 256], strides = [1, 1]} : vector<8x1024xf32> to vector<8x256xf32>
    %29 = arith.negf %28 : vector<8x256xf32>
    %30 = math.exp %29 : vector<8x256xf32>
    %cst_13 = arith.constant 1.000000e+00 : f32
    %31 = vector.broadcast %cst_13 : f32 to vector<8x256xf32>
    %32 = arith.addf %31, %30 : vector<8x256xf32>
    %33 = arith.divf %31, %32 : vector<8x256xf32>
    %34 = arith.mulf %25, %6 : vector<8x256xf32>
    %35 = arith.mulf %19, %27 : vector<8x256xf32>
    %36 = arith.addf %34, %35 : vector<8x256xf32>
    %37 = math.tanh %36 : vector<8x256xf32>
    %38 = arith.mulf %33, %37 : vector<8x256xf32>
    %c0_14 = arith.constant 0 : index
    %c0_15 = arith.constant 0 : index
    %39 = vector.load %arg9[%c0_14, %c0_15] : memref<8x256xf32, #tpu.memory_space<vmem>>, vector<8x256xf32>
    tpu.vector_store %arg9[%c0_14, %c0_15], %38 {strides = array<i32>} : memref<8x256xf32, #tpu.memory_space<vmem>>, vector<8x256xf32>,
    %c0_16 = arith.constant 0 : index
    %c0_17 = arith.constant 0 : index
    %40 = vector.load %arg10[%c0_16, %c0_17] : memref<8x256xf32, #tpu.memory_space<vmem>>, vector<8x256xf32>
    tpu.vector_store %arg10[%c0_16, %c0_17], %36 {strides = array<i32>} : memref<8x256xf32, #tpu.memory_space<vmem>>, vector<8x256xf32>,
    %c0_18 = arith.constant 0 : index
    %c0_19 = arith.constant 0 : index
    %c0_20 = arith.constant 0 : index
    %41 = vector.load %arg6[%c0_18, %c0_19, %c0_20] : memref<1x8x256xf32, #tpu.memory_space<vmem>>, vector<1x8x256xf32>
    %42 = vector.shape_cast %41 : vector<1x8x256xf32> to vector<8x256xf32>
    %43 = vector.shape_cast %38 : vector<8x256xf32> to vector<1x8x256xf32>
    tpu.vector_store %arg6[%c0_18, %c0_19, %c0_20], %43 {strides = array<i32>} : memref<1x8x256xf32, #tpu.memory_space<vmem>>, vector<1x8x256xf32>,
    %c7_i32 = arith.constant 7 : i32
    %44 = arith.cmpi eq, %arg0, %c7_i32 : i32
    %45 = arith.extui %44 : i1 to i32
    %c0_i32_21 = arith.constant 0 : i32
    %46 = arith.cmpi ne, %45, %c0_i32_21 : i32
    scf.if %46 {
      %c0_22 = arith.constant 0 : index
      %c0_23 = arith.constant 0 : index
      %47 = vector.load %arg7[%c0_22, %c0_23] : memref<8x256xf32, #tpu.memory_space<vmem>>, vector<8x256xf32>
      tpu.vector_store %arg7[%c0_22, %c0_23], %38 {strides = array<i32>} : memref<8x256xf32, #tpu.memory_space<vmem>>, vector<8x256xf32>,
      %c0_24 = arith.constant 0 : index
      %c0_25 = arith.constant 0 : index
      %48 = vector.load %arg8[%c0_24, %c0_25] : memref<8x256xf32, #tpu.memory_space<vmem>>, vector<8x256xf32>
      tpu.vector_store %arg8[%c0_24, %c0_25], %36 {strides = array<i32>} : memref<8x256xf32, #tpu.memory_space<vmem>>, vector<8x256xf32>,
    } else {
    }
    return
  }
  func.func @transform_0(%arg0: i32) -> (i32, i32, i32) {
    %c0_i32 = arith.constant 0 : i32
    %c0_i32_0 = arith.constant 0 : i32
    %c0_i32_1 = arith.constant 0 : i32
    return %arg0, %c0_i32, %c0_i32_0 : i32, i32, i32
  }
  func.func @transform_1(%arg0: i32) -> (i32, i32) {
    %c0_i32 = arith.constant 0 : i32
    %c0_i32_0 = arith.constant 0 : i32
    %c0_i32_1 = arith.constant 0 : i32
    return %c0_i32, %c0_i32_0 : i32, i32
  }
  func.func @transform_2(%arg0: i32) -> (i32, i32) {
    %c0_i32 = arith.constant 0 : i32
    %c0_i32_0 = arith.constant 0 : i32
    %c0_i32_1 = arith.constant 0 : i32
    return %c0_i32, %c0_i32_0 : i32, i32
  }
  func.func @transform_3(%arg0: i32) -> (i32, i32) {
    %c0_i32 = arith.constant 0 : i32
    %c0_i32_0 = arith.constant 0 : i32
    %c0_i32_1 = arith.constant 0 : i32
    return %c0_i32, %c0_i32_0 : i32, i32
  }
  func.func @transform_4(%arg0: i32) -> (i32, i32) {
    %c0_i32 = arith.constant 0 : i32
    %c0_i32_0 = arith.constant 0 : i32
    %c0_i32_1 = arith.constant 0 : i32
    return %c0_i32, %c0_i32_0 : i32, i32
  }
  func.func @transform_5(%arg0: i32) -> (i32, i32, i32) {
    %c0_i32 = arith.constant 0 : i32
    %c0_i32_0 = arith.constant 0 : i32
    %c0_i32_1 = arith.constant 0 : i32
    return %arg0, %c0_i32, %c0_i32_0 : i32, i32, i32
  }
  func.func @transform_6(%arg0: i32) -> (i32, i32) {
    %c0_i32 = arith.constant 0 : i32
    %c0_i32_0 = arith.constant 0 : i32
    %c0_i32_1 = arith.constant 0 : i32
    return %c0_i32, %c0_i32_0 : i32, i32
  }
  func.func @transform_7(%arg0: i32) -> (i32, i32) {
    %c0_i32 = arith.constant 0 : i32
    %c0_i32_0 = arith.constant 0 : i32
    %c0_i32_1 = arith.constant 0 : i32
    return %c0_i32, %c0_i32_0 : i32, i32
  }
}

</mosaic_0001>

<bundles_post_ra>
// kernel: tpu_custom_call.1
= control target key start
LH: loop header
LB: loop body
LE: loop exit
PB: predicated region body
PF: predicated region fallthrough
CT: control target
= control target key end

     0   :  { %13 = vsyncpa [#allocation5], 0  ;;  %s3544_s0 = inlined_call_operand.hbm [shape: f32[8,8,256], index: 0, kind: input, shape index: {}]   ;;  %s3545_s1 = inlined_call_operand.hbm [shape: f32[8,256], index: 1, kind: input, shape index: {}]   ;;  %s3546_s2 = inlined_call_operand.hbm [shape: f32[8,256], index: 2, kind: input, shape index: {}]   ;;  %s3547_s3 = inlined_call_operand.hbm [shape: bf16[512,1024], index: 3, kind: input, shape index: {}]   ;;  %s3548_s4 = inlined_call_operand.vmem [shape: f32[1,1024], index: 4, kind: input, shape index: {}]   ;;  %s3549_s5 = inlined_call_operand.hbm [shape: f32[8,8,256], index: 5, kind: output, shape index: {0}]   ;;  %s3550_s6 = inlined_call_operand.hbm [shape: f32[8,256], index: 6, kind: output, shape index: {1}]   ;;  %s3551_s7 = inlined_call_operand.hbm [shape: f32[8,256], index: 7, kind: output, shape index: {2}]  }
   0x1   :  { %15 = vsyncpa [#allocation5 + $0x1], 0 }
   0x2   :  { %16 = vsyncpa [#allocation8], 0 }
   0x3   :  { %17 = vsyncpa [#allocation11], 0 }
   0x4   :  { %18 = vsyncpa [#allocation6], 0 }
   0x5   :  { %20 = vsyncpa [#allocation6 + $0x1], 0 }
   0x6   :  { %21 = vsyncpa [#allocation14], 0  ;;  %s3212_s24 = smov 0   ;;  %s3214_s25 = smov 0  }
   0x7   :  { %s3216_s26 = smov 0   ;;  %s3218_s27 = smov 0  }
   0x8 LB: > { %s3233_s28 = sadd.s32 4294967295, %s3161_s27   ;;  %s2478_s29 = sadd.s32 4294967294, %s3161_s27   ;;  %s3161_s27 = sphi %s3218_s27, %s3580_s27   ;;  %s3157_s26 = sphi %s3216_s26, %s3579_s26   ;;  %s3153_s25 = sphi %s3214_s25, %s3578_s25   ;;  %s3149_s24 = sphi %s3212_s24, %s3577_s24  }
   0x9   : > { %p47_p0 = scmp.ne.s32.totalorder %s3153_s25, %s3149_s24  ;;  %p3552_p1 = scmp.eq.s32.totalorder %s3233_s28, 0 }
   0xa   : > { %p161_p3 = scmp.eq.s32.totalorder %s2478_s29, 7  ;;  %p2479_p5 = scmp.ge.s32.totalorder %s3161_s27, 1 }
   0xb   : > { %p3242_p4 = por %p3552_p1, %p47_p0  ;;  %p210_p7 = scmp.lt.s32.totalorder %s3161_s27, 9 }
   0xc   : > { %p3247_p6 = por %p161_p3, %p47_p0  ;;  %s3163_s10 = smov [#allocation7]  }
   0xd   : > { %s3555_s30 = scalar_select %p3242_p4, 1, 0 }
   0xe   : > { %s3556_s8 = scalar_select %p3247_p6, 1, 0 }
   0xf   : > { %p3253_p9 = pnand %p2479_p5, %p210_p7  ;;  %s223_s11 = sshll.u32 %s3163_s10, 4  ;;  %s224_s11 = int_to_ptr.vmem [resolvable:$true] %s223_s11 }
  0x10   : > { %s3164_s12 = smov [#allocation9]   ;;  %s3165_s15 = smov [#allocation10]  }
  0x11   : > { %s3557_s9 = scalar_select %p3253_p9, 1, 0 }
  0x12   : > { %p2816_p10 = pneg %p3253_p9  ;;  %s234_s13 = sshll.u32 %s3164_s12, 4  ;;  %s3265_s13 = int_to_ptr.vmem [resolvable:$true] %s234_s13 }
  0x13   : > { %s244_s16 = sshll.u32 %s3165_s15, 4  ;;  %s2917_s19 = scalar_lea.hbm %s3545_s1, 256  ;;  %s3267_s16 = int_to_ptr.vmem [resolvable:$true] %s244_s16 }
  0x14   : > { %p3261_p11 = pnand %p2816_p10, %p3552_p1  ;;  %p2918_p12 = scmp.ne.s32.totalorder %s3545_s1, %s2917_s19 }
  0x15   : > { %p2924_p5 = scmp.lt.u32.totalorder %s2917_s19, %s3545_s1 }
  0x16   : > { %p3277_p13 = pneg %p3261_p11 }
  0x18   : > { %p2920_p0 = pnand %p3277_p13, %p2918_p12 }
  0x1a   : > { %p2921_p3 = pneg %p2920_p0 }
  0x1c   : > { %p2926_p7 = pnand %p2924_p5, %p2921_p3 }
  0x1e   : > { %2929 = shalt.err (!%p2926_p7)
}
  0x1f   : > { %s2930_s10 = scalar_lea.vmem %s224_s11, 256  ;;  %p2938_p2 = scmp.lt.s32.totalorder %s224_s11, %s224_s11 }
  0x20   : > { %p2931_p10 = scmp.ne.s32.totalorder %s224_s11, %s2930_s10  ;;  %p2939_p6 = scmp.lt.s32.totalorder %s2930_s10, %s2930_s10 }
  0x22   : > { %p2933_p8 = pnand %p2931_p10, %p3277_p13  ;;  %p2940_p4 = por %p2939_p6, %p2938_p2 }
  0x24   : > { %p2934_p1 = pneg %p2933_p8 }
  0x26   : > { %p2941_p9 = pnand %p2940_p4, %p2934_p1 }
  0x28   : > { %2944 = shalt.err (!%p2941_p9)
}
  0x29   : > { %2819 = dma.hbm_to_vmem [thread:$0]  (!%p3261_p11), %s3545_s1, 256, %s224_s11, [#allocation8]  }
  0x2a   : > { %s2945_s19 = scalar_lea.hbm %s3546_s2, 256 }
  0x2b   : > { %p2946_p8 = scmp.ne.s32.totalorder %s3546_s2, %s2945_s19  ;;  %p2952_p1 = scmp.lt.u32.totalorder %s2945_s19, %s3546_s2 }
  0x2d   : > { %p2948_p12 = pnand %p2946_p8, %p3277_p13 }
  0x2f   : > { %p2949_p2 = pneg %p2948_p12 }
  0x31   : > { %p2954_p4 = pnand %p2952_p1, %p2949_p2 }
  0x33   : > { %2957 = shalt.err (!%p2954_p4)
}
  0x34   : > { %s2958_s11 = scalar_lea.vmem %s3265_s13, 256  ;;  %p2966_p3 = scmp.lt.s32.totalorder %s3265_s13, %s3265_s13 }
  0x35   : > { %p2959_p6 = scmp.ne.s32.totalorder %s3265_s13, %s2958_s11  ;;  %p2967_p5 = scmp.lt.s32.totalorder %s2958_s11, %s2958_s11 }
  0x37   : > { %p2961_p9 = pnand %p2959_p6, %p3277_p13  ;;  %p2968_p7 = por %p2967_p5, %p2966_p3 }
  0x39   : > { %p2962_p0 = pneg %p2961_p9 }
  0x3b   : > { %p2969_p10 = pnand %p2968_p7, %p2962_p0 }
  0x3d   : > { %2972 = shalt.err (!%p2969_p10)
}
  0x3e   : > { %2822 = dma.hbm_to_vmem [thread:$0]  (!%p3261_p11), %s3546_s2, 256, %s3265_s13, [#allocation8]  }
  0x3f   : > { %s2973_s18 = scalar_lea.hbm %s3547_s3, 32768 }
  0x40   : > { %p2974_p8 = scmp.ne.s32.totalorder %s3547_s3, %s2973_s18  ;;  %p2980_p1 = scmp.lt.u32.totalorder %s2973_s18, %s3547_s3 }
  0x42   : > { %p2976_p12 = pnand %p2974_p8, %p3277_p13 }
  0x44   : > { %p2977_p2 = pneg %p2976_p12 }
  0x46   : > { %p2982_p4 = pnand %p2980_p1, %p2977_p2 }
  0x48   : > { %2985 = shalt.err (!%p2982_p4)
}
  0x49   : > { %s2986_s13 = scalar_lea.vmem %s3267_s16, 32768  ;;  %p2994_p3 = scmp.lt.s32.totalorder %s3267_s16, %s3267_s16 }
  0x4a   : > { %p2987_p6 = scmp.ne.s32.totalorder %s3267_s16, %s2986_s13  ;;  %p2995_p5 = scmp.lt.s32.totalorder %s2986_s13, %s2986_s13 }
  0x4c   : > { %p2989_p9 = pnand %p2987_p6, %p3277_p13  ;;  %p2996_p7 = por %p2995_p5, %p2994_p3 }
  0x4e   : > { %p2990_p0 = pneg %p2989_p9 }
  0x50   : > { %p2997_p10 = pnand %p2996_p7, %p2990_p0 }
  0x52   : > { %3000 = shalt.err (!%p2997_p10)
}
  0x53   : > { %s3166_s29 = smov 512   ;;  %s3167_s22 = smov 32  }
  0x54   : > { %2825 = dma.hbm_to_vmem [thread:$0]  (!%p3261_p11), %s3547_s3, 32768, %s3267_s16, [#allocation11], %s3166_s29, %s3166_s29, %s3167_s22  }
  0x55   : > { %s3340_s12 = sadd.s32 1, %s3161_s27   ;;  %s34_s17 = sadd.s32 1, %s3157_s26 }
  0x56   : > { %s31_s15 = ssub.s32 %s3161_s27, %s3340_s12  ;;  %p41_p8 = scmp.ne.s32.totalorder %s3157_s26, %s3153_s25 }
  0x57   : > { %p32_p13 = scmp.eq.s32.totalorder %s31_s15, 0  ;;  %p42_p12 = scmp.eq.s32.totalorder %s3161_s27, 0 }
  0x58   : > { %p2837_p2 = scmp.lt.s32.totalorder %s3161_s27, 8  ;;  %p3560_p4 = scmp.eq.s32.totalorder %s3233_s28, 7 }
  0x59   : > { %s3350_s18 = scalar_select %p32_p13, %s3157_s26, %s34_s17  }
  0x5a   : > { %p43_p1 = por %p42_p12, %p41_p8  ;;  %p3354_p6 = por %p3560_p4, %p41_p8 }
  0x5b   : > { %s261_s14 = sand.u32 1, %s3157_s26   ;;  %s2766_s20 = sshll.u32 %s3161_s27, 8 }
  0x5c   : > { %s2484_s16 = sshll.u32 %s261_s14, 4  ;;  %s3363_s13 = scalar_lea.hbm %s3544_s0, %s2766_s20 }
  0x5d   : > { %s265_s29 = scalar_lea.vmem [#allocation4], %s2484_s16  ;;  %p3365_p11 = pnand %p2837_p2, %p43_p1 }
  0x5e   : > { %s273_s22 = sshll.u32 %s265_s29, 4  ;;  %s262_s10 = scalar_lea.sflag [#allocation5], %s261_s14  ;;  %s3369_s22 = int_to_ptr.vmem [resolvable:$true] %s273_s22 }
  0x5f   : > { %s3001_s15 = scalar_lea.hbm %s3363_s13, 256  ;;  %p3003_p0 = pneg %p3365_p11 }
  0x60   : > { %p3002_p9 = scmp.ne.s32.totalorder %s3363_s13, %s3001_s15  ;;  %s3006_s16 = scalar_lea.hbm %s3544_s0, 2048 }
  0x61   : > { %p3007_p7 = scmp.lt.u32.totalorder %s3363_s13, %s3544_s0  ;;  %p3008_p10 = scmp.lt.u32.totalorder %s3006_s16, %s3001_s15 }
  0x62   : > { %p3004_p3 = pnand %p3003_p0, %p3002_p9  ;;  %p3010_p8 = scmp.lt.u32.totalorder %s3001_s15, %s3363_s13 }
  0x63   : > { %p3009_p13 = por %p3008_p10, %p3007_p7 }
  0x64   : > { %p3005_p5 = pneg %p3004_p3 }
  0x65   : > { %p3011_p12 = por %p3010_p8, %p3009_p13 }
  0x67   : > { %p3012_p2 = pnand %p3011_p12, %p3005_p5 }
  0x69   : > { %3015 = shalt.err (!%p3012_p2)
}
  0x6a   : > { %s3016_s14 = scalar_lea.vmem %s3369_s22, 256  ;;  %s3168_s29 = smov [#allocation4]  }
  0x6b   : > { %p3017_p1 = scmp.ne.s32.totalorder %s3369_s22, %s3016_s14  ;;  %s3021_s17 = sshll.u32 %s3168_s29, 4  ;;  %s3022_s17 = int_to_ptr.vmem [resolvable:$false] %s3021_s17 }
  0x6c   : > { %s3023_s20 = scalar_lea.vmem %s3022_s17, 512  ;;  %p3024_p3 = scmp.lt.s32.totalorder %s3369_s22, %s3022_s17 }
  0x6d   : > { %p3019_p4 = pnand %p3017_p1, %p3003_p0  ;;  %p3025_p7 = scmp.lt.s32.totalorder %s3023_s20, %s3016_s14 }
  0x6f   : > { %p3020_p9 = pneg %p3019_p4  ;;  %p3026_p10 = por %p3025_p7, %p3024_p3 }
  0x71   : > { %p3027_p13 = pnand %p3026_p10, %p3020_p9 }
  0x73   : > { %3030 = shalt.err (!%p3027_p13)
}
  0x74   : > { %2829 = dma.hbm_to_vmem [thread:$0]  (!%p3365_p11), %s3363_s13, 256, %s3369_s22, %s262_s10  }
  0x75   : > { %p3563_p5 = scmp.ne.s32.totalorder %s3557_s9, 0 }
  0x76   : > { %s3399_s15 = sand.u32 (!%p3563_p5), 1, %s3153_s25   ;;  %p3564_p0 = scmp.ne.s32.totalorder (!%p3563_p5), %s3555_s30, 0 }
  0x77   : > { %282 = sbr.rel (%p3563_p5) target bundleno = 723 (0x2d3), region = 40  ;;  %s2488_s16 = sshll.u32 (!%p3563_p5), %s3399_s15, 4 }
  0x78   : > { %s285_s21 = scalar_lea.sflag (!%p3563_p5), [#allocation5], %s3399_s15  ;;  %s3403_s23 = scalar_lea.vmem (!%p3563_p5), [#allocation4], %s2488_s16 }
  0x7e   : > { %3128 = dma.done.wait (%p3564_p0), %s285_s21, 256  }
  0x7f   : > { %3130 = vsyncadd (%p3564_p0), %s285_s21, 4294967040  ;;  %p3565_p11 = scmp.eq.s32.totalorder %s3233_s28, 0 }
  0x81   : > { %3132 = dma.done.wait (%p3565_p11), [#allocation8], 512   ;;  %p3566_p8 = pmov %p3565_p11 }
  0x83   : > { %3134 = vsyncadd (%p3566_p8), [#allocation8], 4294966784  ;;  %p3567_p12 = pmov %p3566_p8 }
  0x84   : > { %p3568_p2 = pmov %p3566_p8 }
  0x85   : > { %3136 = dma.done.wait (%p3567_p12), [#allocation11], 32768  }
  0x86   : > { %3138 = vsyncadd (%p3568_p2), [#allocation11], 4294934528  ;;  %s3417_s9 = scalar_lea.vmem [#allocation12], %s2488_s16  ;;  %p3569_p1 = scmp.ne.s32.totalorder %s3233_s28, 0 }
  0x87   : > { %v335_v0 = vld [vmem:[#allocation7] sm:$0xff] (!%p3569_p1)  ;;  %v336_v1 = vld [vmem:[#allocation7 + $0x8] sm:$0xff] (!%p3569_p1)  ;;  %v339_v2 = vld [vmem:[#allocation9] sm:$0xff] (!%p3569_p1) }
  0x88   : > { %334 = sbr.rel (%p3569_p1) target bundleno = 143 (0x8f), region = 60  ;;  %337 = vst [vmem:[#allocation2] sm:$0xff] (!%p3569_p1), %v335_v0  ;;  %338 = vst [vmem:[#allocation2 + $0x8] sm:$0xff] (!%p3569_p1), %v336_v1  ;;  %v340_v3 = vld [vmem:[#allocation9 + $0x8] sm:$0xff] (!%p3569_p1) }
  0x89   : > { %341 = vst [vmem:[#allocation3] sm:$0xff] (!%p3569_p1), %v339_v2  ;;  %342 = vst [vmem:[#allocation3 + $0x8] sm:$0xff] (!%p3569_p1), %v340_v3 }
  0x8f PF: > { %v353_v4 = vld [vmem:[#allocation10] sm:$0xff]  ;;  %v354_v6 = vld [vmem:[#allocation10 + $0x8] sm:$0xff]  ;;  %p2756_p4 = scmp.ne.s32.totalorder %s3233_s28, 7 }
  0x90   : > { %v357_v5 = vld [vmem:[#allocation10 + $0x20] sm:$0xff]  ;;  %v358_v8 = vld [vmem:[#allocation10 + $0x28] sm:$0xff] }
  0x91   : > { %v2495_v7 = vcombine.high %v353_v4, %v357_v5  ;;  %v2494_v9 = vcombine.low %v353_v4, %v357_v5  ;;  %v361_v10 = vld [vmem:[#allocation10 + $0x40] sm:$0xff]  ;;  %v2497_v12 = vcombine.high %v354_v6, %v358_v8  ;;  %v2496_v13 = vcombine.low %v354_v6, %v358_v8  ;;  %v362_v15 = vld [vmem:[#allocation10 + $0x48] sm:$0xff] }
  0x92   : > { %v365_v11 = vld [vmem:[#allocation10 + $0x60] sm:$0xff]  ;;  %v366_v16 = vld [vmem:[#allocation10 + $0x68] sm:$0xff] }
  0x93   : > { %v2503_v14 = vcombine.high %v361_v10, %v365_v11  ;;  %v369_v17 = vld [vmem:[#allocation10 + $0x80] sm:$0xff]  ;;  %1931 = vmatprep.subr.bf16.mxu0 %v2495_v7  ;;  %v2505_v18 = vcombine.high %v362_v15, %v366_v16  ;;  %v370_v20 = vld [vmem:[#allocation10 + $0x88] sm:$0xff]  ;;  %2013 = vmatprep.subr.bf16.mxu1 %v2497_v12  ;;  %v2502_v22 = vcombine.low %v361_v10, %v365_v11 }
  0x94   : > { %v373_v19 = vld [vmem:[#allocation10 + $0xa0] sm:$0xff]  ;;  %v374_v21 = vld [vmem:[#allocation10 + $0xa8] sm:$0xff]  ;;  %1932 = vmatpush1.bf16.msra.mxu0 %v2494_v9  ;;  %2014 = vmatpush1.bf16.msra.mxu1 %v2496_v13  ;;  %v2504_v23 = vcombine.low %v362_v15, %v366_v16 }
  0x95   : > { %1933 = vmatprep.subr.bf16.mxu0 %v2503_v14  ;;  %v2511_v24 = vcombine.high %v369_v17, %v373_v19  ;;  %2015 = vmatprep.subr.bf16.mxu1 %v2505_v18  ;;  %v2513_v25 = vcombine.high %v370_v20, %v374_v21  ;;  %v377_v26 = vld [vmem:[#allocation10 + $0xc0] sm:$0xff]  ;;  %v378_v28 = vld [vmem:[#allocation10 + $0xc8] sm:$0xff]  ;;  %v2510_v30 = vcombine.low %v369_v17, %v373_v19 }
  0x96   : > { %v381_v27 = vld [vmem:[#allocation10 + $0xe0] sm:$0xff]  ;;  %v382_v29 = vld [vmem:[#allocation10 + $0xe8] sm:$0xff]  ;;  %v2512_v31 = vcombine.low %v370_v20, %v374_v21 }
  0x97   : > { %v2519_v32 = vcombine.high %v377_v26, %v381_v27  ;;  %v2521_v33 = vcombine.high %v378_v28, %v382_v29  ;;  %v385_v34 = vld [vmem:[#allocation10 + $0x100] sm:$0xff]  ;;  %v386_v36 = vld [vmem:[#allocation10 + $0x108] sm:$0xff]  ;;  %v2518_v38 = vcombine.low %v377_v26, %v381_v27  ;;  %v2520_v39 = vcombine.low %v378_v28, %v382_v29 }
  0x98   : > { %1934 = vmatpush1.bf16.msra.mxu0 %v2502_v22  ;;  %2016 = vmatpush1.bf16.msra.mxu1 %v2504_v23  ;;  %v389_v35 = vld [vmem:[#allocation10 + $0x120] sm:$0xff]  ;;  %v390_v37 = vld [vmem:[#allocation10 + $0x128] sm:$0xff] }
  0x99   : > { %1935 = vmatprep.subr.bf16.mxu0 %v2511_v24  ;;  %2017 = vmatprep.subr.bf16.mxu1 %v2513_v25  ;;  %v2527_v40 = vcombine.high %v385_v34, %v389_v35  ;;  %v2529_v41 = vcombine.high %v386_v36, %v390_v37  ;;  %v393_v42 = vld [vmem:[#allocation10 + $0x140] sm:$0xff]  ;;  %v394_v44 = vld [vmem:[#allocation10 + $0x148] sm:$0xff]  ;;  %v2526_v46 = vcombine.low %v385_v34, %v389_v35 }
  0x9a   : > { %v397_v43 = vld [vmem:[#allocation10 + $0x160] sm:$0xff]  ;;  %v398_v45 = vld [vmem:[#allocation10 + $0x168] sm:$0xff]  ;;  %v2528_v47 = vcombine.low %v386_v36, %v390_v37 }
  0x9b   : > { %v2535_v48 = vcombine.high %v393_v42, %v397_v43  ;;  %v2537_v49 = vcombine.high %v394_v44, %v398_v45  ;;  %v401_v50 = vld [vmem:[#allocation10 + $0x180] sm:$0xff]  ;;  %v402_v52 = vld [vmem:[#allocation10 + $0x188] sm:$0xff]  ;;  %v2534_v54 = vcombine.low %v393_v42, %v397_v43  ;;  %v2536_v55 = vcombine.low %v394_v44, %v398_v45 }
  0x9c   : > { %1936 = vmatpush1.bf16.msra.mxu0 %v2510_v30  ;;  %2018 = vmatpush1.bf16.msra.mxu1 %v2512_v31  ;;  %v405_v51 = vld [vmem:[#allocation10 + $0x1a0] sm:$0xff]  ;;  %v406_v53 = vld [vmem:[#allocation10 + $0x1a8] sm:$0xff] }
  0x9d   : > { %1937 = vmatprep.subr.bf16.mxu0 %v2519_v32  ;;  %2019 = vmatprep.subr.bf16.mxu1 %v2521_v33  ;;  %v2543_v56 = vcombine.high %v401_v50, %v405_v51  ;;  %v344_v57 = vld [vmem:[%s3403_s23 + $0x8] sm:$0xff]  ;;  %v2545_v58 = vcombine.high %v402_v52, %v406_v53  ;;  %v409_v59 = vld [vmem:[#allocation10 + $0x1c0] sm:$0xff]  ;;  %v2542_v0 = vcombine.low %v401_v50, %v405_v51 }
  0x9e   : > { %v413_v60 = vld [vmem:[#allocation10 + $0x1e0] sm:$0xff]  ;;  %v3422_v61 = vpack.c.bf16 %v344_v57, %v344_v57  ;;  %v410_v62 = vld [vmem:[#allocation10 + $0x1c8] sm:$0xff]  ;;  %v2544_v1 = vcombine.low %v402_v52, %v406_v53 }
  0x9f   : > { %v414_v63 = vld [vmem:[#allocation10 + $0x1e8] sm:$0xff]  ;;  %v2551_v2 = vcombine.high %v409_v59, %v413_v60  ;;  %v417_v4 = vld [vmem:[#allocation10 + $0x200] sm:$0xff]  ;;  %v2550_v8 = vcombine.low %v409_v59, %v413_v60 }
  0xa0   : > { %1938 = vmatpush1.bf16.msra.mxu0 %v2518_v38  ;;  %2020 = vmatpush1.bf16.msra.mxu1 %v2520_v39  ;;  %v2553_v3 = vcombine.high %v410_v62, %v414_v63  ;;  %v421_v5 = vld [vmem:[#allocation10 + $0x220] sm:$0xff]  ;;  %v418_v6 = vld [vmem:[#allocation10 + $0x208] sm:$0xff]  ;;  %v2552_v9 = vcombine.low %v410_v62, %v414_v63 }
  0xa1   : > { %1939 = vmatprep.subr.bf16.mxu0 %v2527_v40  ;;  %2021 = vmatprep.subr.bf16.mxu1 %v2529_v41  ;;  %v422_v7 = vld [vmem:[#allocation10 + $0x228] sm:$0xff]  ;;  %v2559_v10 = vcombine.high %v417_v4, %v421_v5  ;;  %v425_v12 = vld [vmem:[#allocation10 + $0x240] sm:$0xff]  ;;  %v2558_v16 = vcombine.low %v417_v4, %v421_v5 }
  0xa2   : > { %1963 = vmatprep.mubr.bf16.mxu0 %v3422_v61  ;;  %2045 = vmatprep.mubr.bf16.mxu1 %v3422_v61  ;;  %v2561_v11 = vcombine.high %v418_v6, %v422_v7  ;;  %v429_v13 = vld [vmem:[#allocation10 + $0x260] sm:$0xff]  ;;  %v426_v14 = vld [vmem:[#allocation10 + $0x248] sm:$0xff]  ;;  %v2560_v17 = vcombine.low %v418_v6, %v422_v7 }
  0xa3   : > { %v430_v15 = vld [vmem:[#allocation10 + $0x268] sm:$0xff]  ;;  %v2567_v18 = vcombine.high %v425_v12, %v429_v13  ;;  %v433_v20 = vld [vmem:[#allocation10 + $0x280] sm:$0xff]  ;;  %v2566_v24 = vcombine.low %v425_v12, %v429_v13 }
  0xa4   : > { %1940 = vmatpush1.bf16.msra.mxu0 %v2526_v46  ;;  %2022 = vmatpush1.bf16.msra.mxu1 %v2528_v47  ;;  %v2569_v19 = vcombine.high %v426_v14, %v430_v15  ;;  %v437_v21 = vld [vmem:[#allocation10 + $0x2a0] sm:$0xff]  ;;  %v434_v22 = vld [vmem:[#allocation10 + $0x288] sm:$0xff]  ;;  %v2568_v25 = vcombine.low %v426_v14, %v430_v15 }
  0xa5   : > { %1941 = vmatprep.subr.bf16.mxu0 %v2535_v48  ;;  %2023 = vmatprep.subr.bf16.mxu1 %v2537_v49  ;;  %v438_v23 = vld [vmem:[#allocation10 + $0x2a8] sm:$0xff]  ;;  %v2575_v26 = vcombine.high %v433_v20, %v437_v21  ;;  %v441_v28 = vld [vmem:[#allocation10 + $0x2c0] sm:$0xff]  ;;  %v2574_v32 = vcombine.low %v433_v20, %v437_v21 }
  0xa6   : > { %v2577_v27 = vcombine.high %v434_v22, %v438_v23  ;;  %v445_v29 = vld [vmem:[#allocation10 + $0x2e0] sm:$0xff]  ;;  %v442_v30 = vld [vmem:[#allocation10 + $0x2c8] sm:$0xff]  ;;  %v2576_v33 = vcombine.low %v434_v22, %v438_v23 }
  0xa7   : > { %v446_v31 = vld [vmem:[#allocation10 + $0x2e8] sm:$0xff]  ;;  %v2583_v34 = vcombine.high %v441_v28, %v445_v29  ;;  %v449_v36 = vld [vmem:[#allocation10 + $0x300] sm:$0xff]  ;;  %v2582_v40 = vcombine.low %v441_v28, %v445_v29 }
  0xa8   : > { %1942 = vmatpush1.bf16.msra.mxu0 %v2534_v54  ;;  %2024 = vmatpush1.bf16.msra.mxu1 %v2536_v55  ;;  %v2585_v35 = vcombine.high %v442_v30, %v446_v31  ;;  %v453_v37 = vld [vmem:[#allocation10 + $0x320] sm:$0xff]  ;;  %v450_v38 = vld [vmem:[#allocation10 + $0x308] sm:$0xff]  ;;  %v2584_v41 = vcombine.low %v442_v30, %v446_v31 }
  0xa9   : > { %1943 = vmatprep.subr.bf16.mxu0 %v2543_v56  ;;  %2025 = vmatprep.subr.bf16.mxu1 %v2545_v58  ;;  %v454_v39 = vld [vmem:[#allocation10 + $0x328] sm:$0xff]  ;;  %v2591_v42 = vcombine.high %v449_v36, %v453_v37  ;;  %v457_v44 = vld [vmem:[#allocation10 + $0x340] sm:$0xff]  ;;  %v2590_v48 = vcombine.low %v449_v36, %v453_v37 }
  0xaa   : > { %v2593_v43 = vcombine.high %v450_v38, %v454_v39  ;;  %v461_v45 = vld [vmem:[#allocation10 + $0x360] sm:$0xff]  ;;  %v458_v46 = vld [vmem:[#allocation10 + $0x348] sm:$0xff]  ;;  %v2592_v49 = vcombine.low %v450_v38, %v454_v39 }
  0xab   : > { %v462_v47 = vld [vmem:[#allocation10 + $0x368] sm:$0xff]  ;;  %v2599_v50 = vcombine.high %v457_v44, %v461_v45  ;;  %v465_v52 = vld [vmem:[#allocation10 + $0x380] sm:$0xff]  ;;  %v2598_v56 = vcombine.low %v457_v44, %v461_v45 }
  0xac   : > { %1944 = vmatpush1.bf16.msra.mxu0 %v2542_v0  ;;  %2026 = vmatpush1.bf16.msra.mxu1 %v2544_v1  ;;  %v2601_v51 = vcombine.high %v458_v46, %v462_v47  ;;  %v469_v53 = vld [vmem:[#allocation10 + $0x3a0] sm:$0xff]  ;;  %v466_v54 = vld [vmem:[#allocation10 + $0x388] sm:$0xff]  ;;  %v2600_v57 = vcombine.low %v458_v46, %v462_v47 }
  0xad   : > { %1945 = vmatprep.subr.bf16.mxu0 %v2551_v2  ;;  %2027 = vmatprep.subr.bf16.mxu1 %v2553_v3  ;;  %v470_v55 = vld [vmem:[#allocation10 + $0x3a8] sm:$0xff]  ;;  %v2607_v58 = vcombine.high %v465_v52, %v469_v53  ;;  %v473_v60 = vld [vmem:[#allocation10 + $0x3c0] sm:$0xff]  ;;  %v2606_v1 = vcombine.low %v465_v52, %v469_v53 }
  0xae   : > { %v2609_v59 = vcombine.high %v466_v54, %v470_v55  ;;  %v477_v62 = vld [vmem:[#allocation10 + $0x3e0] sm:$0xff]  ;;  %v474_v63 = vld [vmem:[#allocation10 + $0x3c8] sm:$0xff]  ;;  %v2608_v2 = vcombine.low %v466_v54, %v470_v55 }
  0xaf   : > { %v478_v0 = vld [vmem:[#allocation10 + $0x3e8] sm:$0xff]  ;;  %v2615_v3 = vcombine.high %v473_v60, %v477_v62  ;;  %v481_v5 = vld [vmem:[#allocation10 + $0x400] sm:$0xff] }
  0xb0   : > { %1946 = vmatpush1.bf16.msra.mxu0 %v2550_v8  ;;  %2028 = vmatpush1.bf16.msra.mxu1 %v2552_v9  ;;  %v2617_v4 = vcombine.high %v474_v63, %v478_v0  ;;  %v485_v6 = vld [vmem:[#allocation10 + $0x420] sm:$0xff]  ;;  %v482_v7 = vld [vmem:[#allocation10 + $0x408] sm:$0xff]  ;;  %v2614_v9 = vcombine.low %v473_v60, %v477_v62 }
  0xb1   : > { %1947 = vmatprep.subr.bf16.mxu0 %v2559_v10  ;;  %2029 = vmatprep.subr.bf16.mxu1 %v2561_v11  ;;  %v486_v8 = vld [vmem:[#allocation10 + $0x428] sm:$0xff]  ;;  %v343_v10 = vld [vmem:[%s3403_s23] sm:$0xff]  ;;  %v2616_v11 = vcombine.low %v474_v63, %v478_v0  ;;  %v2623_v12 = vcombine.high %v481_v5, %v485_v6  ;;  %v2622_v20 = vcombine.low %v481_v5, %v485_v6 }
  0xb2   : > { %v2625_v13 = vcombine.high %v482_v7, %v486_v8  ;;  %v489_v14 = vld [vmem:[#allocation10 + $0x440] sm:$0xff]  ;;  %v2624_v21 = vcombine.low %v482_v7, %v486_v8  ;;  %v502_v28 = vld [vmem:[#allocation10 + $0x4a8] sm:$0xff] }
  0xb3   : > { %v493_v15 = vld [vmem:[#allocation10 + $0x460] sm:$0xff]  ;;  %v510_v36 = vld [vmem:[#allocation10 + $0x4e8] sm:$0xff] }
  0xb4   : > { %1948 = vmatpush1.bf16.msra.mxu0 %v2558_v16  ;;  %2030 = vmatpush1.bf16.msra.mxu1 %v2560_v17  ;;  %v3427_v16 = vpack.c.bf16 %v343_v10, %v343_v10  ;;  %v490_v17 = vld [vmem:[#allocation10 + $0x448] sm:$0xff]  ;;  %v2631_v22 = vcombine.high %v489_v14, %v493_v15  ;;  %v2630_v29 = vcombine.low %v489_v14, %v493_v15  ;;  %v545_v10 = vld [vmem:[#allocation10 + $0x600] sm:$0xff] }
  0xb5   : > { %1949 = vmatprep.subr.bf16.mxu0 %v2567_v18  ;;  %2031 = vmatprep.subr.bf16.mxu1 %v2569_v19  ;;  %v494_v18 = vld [vmem:[#allocation10 + $0x468] sm:$0xff] }
  0xb6   : > { %v346_v19 = vld [vmem:[#allocation2 + $0x8] sm:$0xff]  ;;  %v2633_v23 = vcombine.high %v490_v17, %v494_v18  ;;  %v2632_v30 = vcombine.low %v490_v17, %v494_v18 }
  0xb7   : > { %v518_v44 = vld [vmem:[#allocation10 + $0x528] sm:$0xff] }
  0xb8   : > { %1950 = vmatpush1.bf16.msra.mxu0 %v2566_v24  ;;  %2032 = vmatpush1.bf16.msra.mxu1 %v2568_v25  ;;  %v497_v24 = vld [vmem:[#allocation10 + $0x480] sm:$0xff]  ;;  %v526_v52 = vld [vmem:[#allocation10 + $0x568] sm:$0xff] }
  0xb9   : > { %1951 = vmatprep.subr.bf16.mxu0 %v2575_v26  ;;  %2033 = vmatprep.subr.bf16.mxu1 %v2577_v27  ;;  %v501_v25 = vld [vmem:[#allocation10 + $0x4a0] sm:$0xff]  ;;  %v3429_v26 = vpack.c.bf16 %v346_v19, %v346_v19  ;;  %v498_v27 = vld [vmem:[#allocation10 + $0x488] sm:$0xff] }
  0xba   : > { %v2639_v31 = vcombine.high %v497_v24, %v501_v25  ;;  %v2638_v37 = vcombine.low %v497_v24, %v501_v25  ;;  %v2640_v38 = vcombine.low %v498_v27, %v502_v28  ;;  %v534_v60 = vld [vmem:[#allocation10 + $0x5a8] sm:$0xff]  ;;  %v553_v19 = vld [vmem:[#allocation10 + $0x640] sm:$0xff] }
  0xbb   : > { %v542_v5 = vld [vmem:[#allocation10 + $0x5e8] sm:$0xff] }
  0xbc   : > { %1952 = vmatpush1.bf16.msra.mxu0 %v2574_v32  ;;  %2034 = vmatpush1.bf16.msra.mxu1 %v2576_v33  ;;  %v2641_v32 = vcombine.high %v498_v27, %v502_v28  ;;  %v505_v33 = vld [vmem:[#allocation10 + $0x4c0] sm:$0xff] }
  0xbd   : > { %1953 = vmatprep.subr.bf16.mxu0 %v2583_v34  ;;  %2035 = vmatprep.subr.bf16.mxu1 %v2585_v35  ;;  %v509_v34 = vld [vmem:[#allocation10 + $0x4e0] sm:$0xff]  ;;  %v506_v35 = vld [vmem:[#allocation10 + $0x4c8] sm:$0xff] }
  0xbe   : > { %v2647_v39 = vcombine.high %v505_v33, %v509_v34  ;;  %v2646_v45 = vcombine.low %v505_v33, %v509_v34  ;;  %v2648_v46 = vcombine.low %v506_v35, %v510_v36  ;;  %v561_v28 = vld [vmem:[#allocation10 + $0x680] sm:$0xff] }
  0xc0   : > { %1954 = vmatpush1.bf16.msra.mxu0 %v2582_v40  ;;  %2036 = vmatpush1.bf16.msra.mxu1 %v2584_v41  ;;  %v2649_v40 = vcombine.high %v506_v35, %v510_v36  ;;  %v513_v41 = vld [vmem:[#allocation10 + $0x500] sm:$0xff] }
  0xc1   : > { %1955 = vmatprep.subr.bf16.mxu0 %v2591_v42  ;;  %2037 = vmatprep.subr.bf16.mxu1 %v2593_v43  ;;  %v517_v42 = vld [vmem:[#allocation10 + $0x520] sm:$0xff]  ;;  %v514_v43 = vld [vmem:[#allocation10 + $0x508] sm:$0xff] }
  0xc2   : > { %v2655_v47 = vcombine.high %v513_v41, %v517_v42  ;;  %v2654_v53 = vcombine.low %v513_v41, %v517_v42  ;;  %v2656_v54 = vcombine.low %v514_v43, %v518_v44  ;;  %v569_v36 = vld [vmem:[#allocation10 + $0x6c0] sm:$0xff] }
  0xc4   : > { %1956 = vmatpush1.bf16.msra.mxu0 %v2590_v48  ;;  %2038 = vmatpush1.bf16.msra.mxu1 %v2592_v49  ;;  %v2657_v48 = vcombine.high %v514_v43, %v518_v44  ;;  %v521_v49 = vld [vmem:[#allocation10 + $0x540] sm:$0xff] }
  0xc5   : > { %1957 = vmatprep.subr.bf16.mxu0 %v2599_v50  ;;  %2039 = vmatprep.subr.bf16.mxu1 %v2601_v51  ;;  %v525_v50 = vld [vmem:[#allocation10 + $0x560] sm:$0xff]  ;;  %v522_v51 = vld [vmem:[#allocation10 + $0x548] sm:$0xff] }
  0xc6   : > { %v2663_v55 = vcombine.high %v521_v49, %v525_v50  ;;  %v2662_v62 = vcombine.low %v521_v49, %v525_v50  ;;  %v2664_v63 = vcombine.low %v522_v51, %v526_v52  ;;  %v577_v44 = vld [vmem:[#allocation10 + $0x700] sm:$0xff] }
  0xc8   : > { %1958 = vmatpush1.bf16.msra.mxu0 %v2598_v56  ;;  %2040 = vmatpush1.bf16.msra.mxu1 %v2600_v57  ;;  %v2665_v56 = vcombine.high %v522_v51, %v526_v52  ;;  %v529_v57 = vld [vmem:[#allocation10 + $0x580] sm:$0xff] }
  0xc9   : > { %1959 = vmatprep.subr.bf16.mxu0 %v2607_v58  ;;  %2041 = vmatprep.subr.bf16.mxu1 %v2609_v59  ;;  %v533_v58 = vld [vmem:[#allocation10 + $0x5a0] sm:$0xff]  ;;  %v530_v59 = vld [vmem:[#allocation10 + $0x588] sm:$0xff] }
  0xca   : > { %v2671_v0 = vcombine.high %v529_v57, %v533_v58  ;;  %v2670_v6 = vcombine.low %v529_v57, %v533_v58  ;;  %v2672_v7 = vcombine.low %v530_v59, %v534_v60  ;;  %v585_v52 = vld [vmem:[#allocation10 + $0x740] sm:$0xff] }
  0xcc   : > { %1960 = vmatpush1.bf16.msra.mxu0 %v2606_v1  ;;  %2042 = vmatpush1.bf16.msra.mxu1 %v2608_v2  ;;  %v2673_v1 = vcombine.high %v530_v59, %v534_v60  ;;  %v537_v2 = vld [vmem:[#allocation10 + $0x5c0] sm:$0xff] }
  0xcd   : > { %1961 = vmatprep.subr.bf16.mxu0 %v2615_v3  ;;  %2043 = vmatprep.subr.bf16.mxu1 %v2617_v4  ;;  %v541_v3 = vld [vmem:[#allocation10 + $0x5e0] sm:$0xff]  ;;  %v538_v4 = vld [vmem:[#allocation10 + $0x5c8] sm:$0xff] }
  0xce   : > { %v2679_v8 = vcombine.high %v537_v2, %v541_v3  ;;  %v2678_v14 = vcombine.low %v537_v2, %v541_v3  ;;  %v2680_v15 = vcombine.low %v538_v4, %v542_v5  ;;  %v593_v60 = vld [vmem:[#allocation10 + $0x780] sm:$0xff] }
  0xd0   : > { %1962 = vmatpush1.bf16.msra.mxu0 %v2614_v9  ;;  %2044 = vmatpush1.bf16.msra.mxu1 %v2616_v11  ;;  %v2681_v9 = vcombine.high %v538_v4, %v542_v5  ;;  %v549_v11 = vld [vmem:[#allocation10 + $0x620] sm:$0xff] }
  0xd1   : > { %1972 = vmatprep.subr.bf16.mxu0 %v2623_v12  ;;  %2054 = vmatprep.subr.bf16.mxu1 %v2625_v13  ;;  %v546_v12 = vld [vmem:[#allocation10 + $0x608] sm:$0xff]  ;;  %v2687_v17 = vcombine.high %v545_v10, %v549_v11  ;;  %v601_v5 = vld [vmem:[#allocation10 + $0x7c0] sm:$0xff] }
  0xd2   : > { %v550_v13 = vld [vmem:[#allocation10 + $0x628] sm:$0xff] }
  0xd3   : > { %1964 = vmatmul.mubr.bf16.vlgmr.msra.gmra.mrb[0].mxu0 %v3427_v16  ;;  %2046 = vmatmul.mubr.bf16.vlgmr.msra.gmra.mrb[0].mxu1 %v3427_v16  ;;  %v2689_v18 = vcombine.high %v546_v12, %v550_v13  ;;  %v2688_v24 = vcombine.low %v546_v12, %v550_v13  ;;  %v355_v13 = vld [vmem:[#allocation10 + $0x10] sm:$0xff] }
  0xd4   : > { %1973 = vmatpush1.bf16.msra.mxu0 %v2622_v20  ;;  %2055 = vmatpush1.bf16.msra.mxu1 %v2624_v21  ;;  %v557_v20 = vld [vmem:[#allocation10 + $0x660] sm:$0xff]  ;;  %v554_v21 = vld [vmem:[#allocation10 + $0x648] sm:$0xff] }
  0xd5   : > { %1974 = vmatprep.subr.bf16.mxu0 %v2631_v22  ;;  %2056 = vmatprep.subr.bf16.mxu1 %v2633_v23  ;;  %v558_v22 = vld [vmem:[#allocation10 + $0x668] sm:$0xff]  ;;  %v2686_v23 = vcombine.low %v545_v10, %v549_v11  ;;  %v2695_v25 = vcombine.high %v553_v19, %v557_v20 }
  0xd6   : > { %2004 = vmatprep.mubr.bf16.mxu0 %v3429_v26  ;;  %2086 = vmatprep.mubr.bf16.mxu1 %v3429_v26  ;;  %v2697_v27 = vcombine.high %v554_v21, %v558_v22  ;;  %v2696_v33 = vcombine.low %v554_v21, %v558_v22 }
  0xd8   : > { %1975 = vmatpush1.bf16.msra.mxu0 %v2630_v29  ;;  %2057 = vmatpush1.bf16.msra.mxu1 %v2632_v30  ;;  %v565_v29 = vld [vmem:[#allocation10 + $0x6a0] sm:$0xff]  ;;  %v562_v30 = vld [vmem:[#allocation10 + $0x688] sm:$0xff] }
  0xd9   : > { %1976 = vmatprep.subr.bf16.mxu0 %v2639_v31  ;;  %2058 = vmatprep.subr.bf16.mxu1 %v2641_v32  ;;  %v566_v31 = vld [vmem:[#allocation10 + $0x6a8] sm:$0xff]  ;;  %v2694_v32 = vcombine.low %v553_v19, %v557_v20  ;;  %v2703_v34 = vcombine.high %v561_v28, %v565_v29  ;;  %v345_v19 = vld [vmem:[#allocation2] sm:$0xff] }
  0xda   : > { %v2705_v35 = vcombine.high %v562_v30, %v566_v31  ;;  %v2704_v41 = vcombine.low %v562_v30, %v566_v31 }
  0xdc   : > { %1977 = vmatpush1.bf16.msra.mxu0 %v2638_v37  ;;  %2059 = vmatpush1.bf16.msra.mxu1 %v2640_v38  ;;  %v573_v37 = vld [vmem:[#allocation10 + $0x6e0] sm:$0xff]  ;;  %v570_v38 = vld [vmem:[#allocation10 + $0x6c8] sm:$0xff] }
  0xdd   : > { %1978 = vmatprep.subr.bf16.mxu0 %v2647_v39  ;;  %2060 = vmatprep.subr.bf16.mxu1 %v2649_v40  ;;  %v574_v39 = vld [vmem:[#allocation10 + $0x6e8] sm:$0xff]  ;;  %v2702_v40 = vcombine.low %v561_v28, %v565_v29  ;;  %v2711_v42 = vcombine.high %v569_v36, %v573_v37  ;;  %v368_v28 = vld [vmem:[#allocation10 + $0x78] sm:$0xff] }
  0xde   : > { %v2713_v43 = vcombine.high %v570_v38, %v574_v39  ;;  %v2712_v49 = vcombine.low %v570_v38, %v574_v39 }
  0xe0   : > { %1979 = vmatpush1.bf16.msra.mxu0 %v2646_v45  ;;  %2061 = vmatpush1.bf16.msra.mxu1 %v2648_v46  ;;  %v581_v45 = vld [vmem:[#allocation10 + $0x720] sm:$0xff]  ;;  %v578_v46 = vld [vmem:[#allocation10 + $0x708] sm:$0xff] }
  0xe1   : > { %1980 = vmatprep.subr.bf16.mxu0 %v2655_v47  ;;  %2062 = vmatprep.subr.bf16.mxu1 %v2657_v48  ;;  %v582_v47 = vld [vmem:[#allocation10 + $0x728] sm:$0xff]  ;;  %v2710_v48 = vcombine.low %v569_v36, %v573_v37  ;;  %v2719_v50 = vcombine.high %v577_v44, %v581_v45  ;;  %v376_v36 = vld [vmem:[#allocation10 + $0xb8] sm:$0xff] }
  0xe2   : > { %v2721_v51 = vcombine.high %v578_v46, %v582_v47  ;;  %v2720_v57 = vcombine.low %v578_v46, %v582_v47 }
  0xe4   : > { %1981 = vmatpush1.bf16.msra.mxu0 %v2654_v53  ;;  %2063 = vmatpush1.bf16.msra.mxu1 %v2656_v54  ;;  %v589_v53 = vld [vmem:[#allocation10 + $0x760] sm:$0xff]  ;;  %v586_v54 = vld [vmem:[#allocation10 + $0x748] sm:$0xff] }
  0xe5   : > { %1982 = vmatprep.subr.bf16.mxu0 %v2663_v55  ;;  %2064 = vmatprep.subr.bf16.mxu1 %v2665_v56  ;;  %v590_v55 = vld [vmem:[#allocation10 + $0x768] sm:$0xff]  ;;  %v2718_v56 = vcombine.low %v577_v44, %v581_v45  ;;  %v2727_v58 = vcombine.high %v585_v52, %v589_v53  ;;  %v384_v44 = vld [vmem:[#allocation10 + $0xf8] sm:$0xff] }
  0xe6   : > { %v2729_v59 = vcombine.high %v586_v54, %v590_v55  ;;  %v2728_v2 = vcombine.low %v586_v54, %v590_v55 }
  0xe8   : > { %1983 = vmatpush1.bf16.msra.mxu0 %v2662_v62  ;;  %2065 = vmatpush1.bf16.msra.mxu1 %v2664_v63  ;;  %v597_v62 = vld [vmem:[#allocation10 + $0x7a0] sm:$0xff]  ;;  %v594_v63 = vld [vmem:[#allocation10 + $0x788] sm:$0xff] }
  0xe9   : > { %1984 = vmatprep.subr.bf16.mxu0 %v2671_v0  ;;  %2066 = vmatprep.subr.bf16.mxu1 %v2673_v1  ;;  %v598_v0 = vld [vmem:[#allocation10 + $0x7a8] sm:$0xff]  ;;  %v2726_v1 = vcombine.low %v585_v52, %v589_v53  ;;  %v2735_v3 = vcombine.high %v593_v60, %v597_v62  ;;  %v392_v52 = vld [vmem:[#allocation10 + $0x138] sm:$0xff] }
  0xea   : > { %v2737_v4 = vcombine.high %v594_v63, %v598_v0  ;;  %v2736_v10 = vcombine.low %v594_v63, %v598_v0 }
  0xec   : > { %1985 = vmatpush1.bf16.msra.mxu0 %v2670_v6  ;;  %2067 = vmatpush1.bf16.msra.mxu1 %v2672_v7  ;;  %v605_v6 = vld [vmem:[#allocation10 + $0x7e0] sm:$0xff]  ;;  %v602_v7 = vld [vmem:[#allocation10 + $0x7c8] sm:$0xff] }
  0xed   : > { %1986 = vmatprep.subr.bf16.mxu0 %v2679_v8  ;;  %2068 = vmatprep.subr.bf16.mxu1 %v2681_v9  ;;  %v606_v8 = vld [vmem:[#allocation10 + $0x7e8] sm:$0xff]  ;;  %v2734_v9 = vcombine.low %v593_v60, %v597_v62  ;;  %v2743_v11 = vcombine.high %v601_v5, %v605_v6 }
  0xee   : > { %v2745_v12 = vcombine.high %v602_v7, %v606_v8  ;;  %v2744_v20 = vcombine.low %v602_v7, %v606_v8 }
  0xf0   : > { %1987 = vmatpush1.bf16.msra.mxu0 %v2678_v14  ;;  %2069 = vmatpush1.bf16.msra.mxu1 %v2680_v15  ;;  %v359_v14 = vld [vmem:[#allocation10 + $0x30] sm:$0xff]  ;;  %v356_v15 = vld [vmem:[#allocation10 + $0x18] sm:$0xff] }
  0xf1   : > { %1988 = vmatprep.subr.bf16.mxu0 %v2687_v17  ;;  %2070 = vmatprep.subr.bf16.mxu1 %v2689_v18  ;;  %v360_v17 = vld [vmem:[#allocation10 + $0x38] sm:$0xff]  ;;  %v2742_v18 = vcombine.low %v601_v5, %v605_v6  ;;  %v2499_v21 = vcombine.high %v355_v13, %v359_v14  ;;  %v2498_v29 = vcombine.low %v355_v13, %v359_v14 }
  0xf2   : > { %v2501_v22 = vcombine.high %v356_v15, %v360_v17  ;;  %v2500_v30 = vcombine.low %v356_v15, %v360_v17 }
  0xf4   : > { %1989 = vmatpush1.bf16.msra.mxu0 %v2686_v23  ;;  %2071 = vmatpush1.bf16.msra.mxu1 %v2688_v24  ;;  %v363_v23 = vld [vmem:[#allocation10 + $0x50] sm:$0xff] }
  0xf5   : > { %1990 = vmatprep.subr.bf16.mxu0 %v2695_v25  ;;  %2072 = vmatprep.subr.bf16.mxu1 %v2697_v27  ;;  %v367_v24 = vld [vmem:[#allocation10 + $0x70] sm:$0xff]  ;;  %v3435_v25 = vpack.c.bf16 %v345_v19, %v345_v19  ;;  %v364_v27 = vld [vmem:[#allocation10 + $0x58] sm:$0xff] }
  0xf6   : > { %v2507_v31 = vcombine.high %v363_v23, %v367_v24  ;;  %v2506_v37 = vcombine.low %v363_v23, %v367_v24  ;;  %v2508_v38 = vcombine.low %v364_v27, %v368_v28  ;;  %v423_v19 = vld [vmem:[#allocation10 + $0x230] sm:$0xff] }
  0xf8   : > { %1991 = vmatpush1.bf16.msra.mxu0 %v2694_v32  ;;  %2073 = vmatpush1.bf16.msra.mxu1 %v2696_v33  ;;  %v2509_v32 = vcombine.high %v364_v27, %v368_v28  ;;  %v371_v33 = vld [vmem:[#allocation10 + $0x90] sm:$0xff] }
  0xf9   : > { %1992 = vmatprep.subr.bf16.mxu0 %v2703_v34  ;;  %2074 = vmatprep.subr.bf16.mxu1 %v2705_v35  ;;  %v375_v34 = vld [vmem:[#allocation10 + $0xb0] sm:$0xff]  ;;  %v372_v35 = vld [vmem:[#allocation10 + $0x98] sm:$0xff] }
  0xfa   : > { %v2515_v39 = vcombine.high %v371_v33, %v375_v34  ;;  %v2514_v45 = vcombine.low %v371_v33, %v375_v34  ;;  %v2516_v46 = vcombine.low %v372_v35, %v376_v36  ;;  %v427_v28 = vld [vmem:[#allocation10 + $0x250] sm:$0xff] }
  0xfc   : > { %1993 = vmatpush1.bf16.msra.mxu0 %v2702_v40  ;;  %2075 = vmatpush1.bf16.msra.mxu1 %v2704_v41  ;;  %v2517_v40 = vcombine.high %v372_v35, %v376_v36  ;;  %v379_v41 = vld [vmem:[#allocation10 + $0xd0] sm:$0xff] }
  0xfd   : > { %1994 = vmatprep.subr.bf16.mxu0 %v2711_v42  ;;  %2076 = vmatprep.subr.bf16.mxu1 %v2713_v43  ;;  %v383_v42 = vld [vmem:[#allocation10 + $0xf0] sm:$0xff]  ;;  %v380_v43 = vld [vmem:[#allocation10 + $0xd8] sm:$0xff] }
  0xfe   : > { %v2523_v47 = vcombine.high %v379_v41, %v383_v42  ;;  %v2522_v53 = vcombine.low %v379_v41, %v383_v42  ;;  %v2524_v54 = vcombine.low %v380_v43, %v384_v44  ;;  %v435_v36 = vld [vmem:[#allocation10 + $0x290] sm:$0xff] }
 0x100   : > { %1995 = vmatpush1.bf16.msra.mxu0 %v2710_v48  ;;  %2077 = vmatpush1.bf16.msra.mxu1 %v2712_v49  ;;  %v2525_v48 = vcombine.high %v380_v43, %v384_v44  ;;  %v387_v49 = vld [vmem:[#allocation10 + $0x110] sm:$0xff] }
 0x101   : > { %1996 = vmatprep.subr.bf16.mxu0 %v2719_v50  ;;  %2078 = vmatprep.subr.bf16.mxu1 %v2721_v51  ;;  %v391_v50 = vld [vmem:[#allocation10 + $0x130] sm:$0xff]  ;;  %v388_v51 = vld [vmem:[#allocation10 + $0x118] sm:$0xff] }
 0x102   : > { %v2531_v55 = vcombine.high %v387_v49, %v391_v50  ;;  %v2530_v60 = vcombine.low %v387_v49, %v391_v50  ;;  %v2532_v62 = vcombine.low %v388_v51, %v392_v52  ;;  %v443_v44 = vld [vmem:[#allocation10 + $0x2d0] sm:$0xff] }
 0x104   : > { %1997 = vmatpush1.bf16.msra.mxu0 %v2718_v56  ;;  %2079 = vmatpush1.bf16.msra.mxu1 %v2720_v57  ;;  %v395_v56 = vld [vmem:[#allocation10 + $0x150] sm:$0xff] }
 0x105   : > { %1998 = vmatprep.subr.bf16.mxu0 %v2727_v58  ;;  %2080 = vmatprep.subr.bf16.mxu1 %v2729_v59  ;;  %v399_v57 = vld [vmem:[#allocation10 + $0x170] sm:$0xff]  ;;  %v396_v58 = vld [vmem:[#allocation10 + $0x158] sm:$0xff] }
 0x106   : > { %v400_v59 = vld [vmem:[#allocation10 + $0x178] sm:$0xff]  ;;  %v2539_v63 = vcombine.high %v395_v56, %v399_v57  ;;  %v2538_v5 = vcombine.low %v395_v56, %v399_v57 }
 0x107   : > { %v2541_v0 = vcombine.high %v396_v58, %v400_v59  ;;  %v2540_v6 = vcombine.low %v396_v58, %v400_v59  ;;  %v459_v59 = vld [vmem:[#allocation10 + $0x350] sm:$0xff] }
 0x108   : > { %1999 = vmatpush1.bf16.msra.mxu0 %v2726_v1  ;;  %2081 = vmatpush1.bf16.msra.mxu1 %v2728_v2  ;;  %v403_v1 = vld [vmem:[#allocation10 + $0x190] sm:$0xff] }
 0x109   : > { %2000 = vmatprep.subr.bf16.mxu0 %v2735_v3  ;;  %2082 = vmatprep.subr.bf16.mxu1 %v2737_v4  ;;  %v407_v2 = vld [vmem:[#allocation10 + $0x1b0] sm:$0xff]  ;;  %v404_v3 = vld [vmem:[#allocation10 + $0x198] sm:$0xff] }
 0x10a   : > { %v408_v4 = vld [vmem:[#allocation10 + $0x1b8] sm:$0xff]  ;;  %v2547_v7 = vcombine.high %v403_v1, %v407_v2  ;;  %v2546_v13 = vcombine.low %v403_v1, %v407_v2 }
 0x10b   : > { %v2549_v8 = vcombine.high %v404_v3, %v408_v4  ;;  %v2548_v14 = vcombine.low %v404_v3, %v408_v4  ;;  %v467_v4 = vld [vmem:[#allocation10 + $0x390] sm:$0xff] }
 0x10c   : > { %2001 = vmatpush1.bf16.msra.mxu0 %v2734_v9  ;;  %2083 = vmatpush1.bf16.msra.mxu1 %v2736_v10  ;;  %v411_v9 = vld [vmem:[#allocation10 + $0x1d0] sm:$0xff] }
 0x10d   : > { %2002 = vmatprep.subr.bf16.mxu0 %v2743_v11  ;;  %2084 = vmatprep.subr.bf16.mxu1 %v2745_v12  ;;  %v415_v10 = vld [vmem:[#allocation10 + $0x1f0] sm:$0xff]  ;;  %v412_v11 = vld [vmem:[#allocation10 + $0x1d8] sm:$0xff] }
 0x10e   : > { %v416_v12 = vld [vmem:[#allocation10 + $0x1f8] sm:$0xff]  ;;  %v2555_v15 = vcombine.high %v411_v9, %v415_v10 }
 0x10f   : > { %v2557_v17 = vcombine.high %v412_v11, %v416_v12  ;;  %v2556_v23 = vcombine.low %v412_v11, %v416_v12  ;;  %v475_v12 = vld [vmem:[#allocation10 + $0x3d0] sm:$0xff] }
 0x110   : > { %2003 = vmatpush1.bf16.msra.mxu0 %v2742_v18  ;;  %2085 = vmatpush1.bf16.msra.mxu1 %v2744_v20  ;;  %v419_v18 = vld [vmem:[#allocation10 + $0x210] sm:$0xff]  ;;  %v420_v20 = vld [vmem:[#allocation10 + $0x218] sm:$0xff] }
 0x111   : > { %2095 = vmatprep.subr.bf16.mxu0 %v2499_v21  ;;  %2177 = vmatprep.subr.bf16.mxu1 %v2501_v22  ;;  %v424_v21 = vld [vmem:[#allocation10 + $0x238] sm:$0xff]  ;;  %v2554_v22 = vcombine.low %v411_v9, %v415_v10  ;;  %v2563_v24 = vcombine.high %v419_v18, %v423_v19 }
 0x112   : > { %v2565_v27 = vcombine.high %v420_v20, %v424_v21  ;;  %v2564_v33 = vcombine.low %v420_v20, %v424_v21  ;;  %v483_v21 = vld [vmem:[#allocation10 + $0x410] sm:$0xff] }
 0x113   : > { %2005 = vmatmul.mubr.bf16.vlgmr.msra.gmra.mrb[0].mxu0 %v3435_v25  ;;  %2087 = vmatmul.mubr.bf16.vlgmr.msra.gmra.mrb[0].mxu1 %v3435_v25 }
 0x114   : > { %2096 = vmatpush1.bf16.msra.mxu0 %v2498_v29  ;;  %2178 = vmatpush1.bf16.msra.mxu1 %v2500_v30  ;;  %v431_v29 = vld [vmem:[#allocation10 + $0x270] sm:$0xff]  ;;  %v428_v30 = vld [vmem:[#allocation10 + $0x258] sm:$0xff] }
 0x115   : > { %2097 = vmatprep.subr.bf16.mxu0 %v2507_v31  ;;  %2179 = vmatprep.subr.bf16.mxu1 %v2509_v32  ;;  %v432_v31 = vld [vmem:[#allocation10 + $0x278] sm:$0xff]  ;;  %v2562_v32 = vcombine.low %v419_v18, %v423_v19  ;;  %v2571_v34 = vcombine.high %v427_v28, %v431_v29 }
 0x116   : > { %2127 = vmatprep.mubr.bf16.mxu0 %v3422_v61  ;;  %2209 = vmatprep.mubr.bf16.mxu1 %v3422_v61  ;;  %v2533_v61 = vcombine.high %v388_v51, %v392_v52  ;;  %v2573_v35 = vcombine.high %v428_v30, %v432_v31  ;;  %v2572_v41 = vcombine.low %v428_v30, %v432_v31  ;;  %v451_v52 = vld [vmem:[#allocation10 + $0x310] sm:$0xff] }
 0x117   : > { %v491_v31 = vld [vmem:[#allocation10 + $0x450] sm:$0xff] }
 0x118   : > { %2098 = vmatpush1.bf16.msra.mxu0 %v2506_v37  ;;  %2180 = vmatpush1.bf16.msra.mxu1 %v2508_v38  ;;  %v439_v37 = vld [vmem:[#allocation10 + $0x2b0] sm:$0xff]  ;;  %v436_v38 = vld [vmem:[#allocation10 + $0x298] sm:$0xff] }
 0x119   : > { %2099 = vmatprep.subr.bf16.mxu0 %v2515_v39  ;;  %2181 = vmatprep.subr.bf16.mxu1 %v2517_v40  ;;  %v440_v39 = vld [vmem:[#allocation10 + $0x2b8] sm:$0xff]  ;;  %v2570_v40 = vcombine.low %v427_v28, %v431_v29  ;;  %v2579_v42 = vcombine.high %v435_v36, %v439_v37 }
 0x11a   : > { %v2581_v43 = vcombine.high %v436_v38, %v440_v39  ;;  %v2580_v49 = vcombine.low %v436_v38, %v440_v39  ;;  %v499_v39 = vld [vmem:[#allocation10 + $0x490] sm:$0xff] }
 0x11c   : > { %2100 = vmatpush1.bf16.msra.mxu0 %v2514_v45  ;;  %2182 = vmatpush1.bf16.msra.mxu1 %v2516_v46  ;;  %v447_v45 = vld [vmem:[#allocation10 + $0x2f0] sm:$0xff]  ;;  %v444_v46 = vld [vmem:[#allocation10 + $0x2d8] sm:$0xff] }
 0x11d   : > { %2101 = vmatprep.subr.bf16.mxu0 %v2523_v47  ;;  %2183 = vmatprep.subr.bf16.mxu1 %v2525_v48  ;;  %v448_v47 = vld [vmem:[#allocation10 + $0x2f8] sm:$0xff]  ;;  %v2578_v48 = vcombine.low %v435_v36, %v439_v37  ;;  %v2587_v50 = vcombine.high %v443_v44, %v447_v45 }
 0x11e   : > { %v2589_v51 = vcombine.high %v444_v46, %v448_v47  ;;  %v2588_v56 = vcombine.low %v444_v46, %v448_v47  ;;  %v507_v47 = vld [vmem:[#allocation10 + $0x4d0] sm:$0xff] }
 0x120   : > { %2102 = vmatpush1.bf16.msra.mxu0 %v2522_v53  ;;  %2184 = vmatpush1.bf16.msra.mxu1 %v2524_v54  ;;  %v455_v53 = vld [vmem:[#allocation10 + $0x330] sm:$0xff]  ;;  %v452_v54 = vld [vmem:[#allocation10 + $0x318] sm:$0xff] }
 0x121   : > { %2103 = vmatprep.subr.bf16.mxu0 %v2531_v55  ;;  %2185 = vmatprep.subr.bf16.mxu1 %v2533_v61  ;;  %v456_v55 = vld [vmem:[#allocation10 + $0x338] sm:$0xff]  ;;  %v2586_v61 = vcombine.low %v443_v44, %v447_v45  ;;  %v2595_v57 = vcombine.high %v451_v52, %v455_v53 }
 0x122   : > { %v2597_v58 = vcombine.high %v452_v54, %v456_v55  ;;  %v2596_v1 = vcombine.low %v452_v54, %v456_v55  ;;  %v515_v54 = vld [vmem:[#allocation10 + $0x510] sm:$0xff] }
 0x123   : > { %v519_v55 = vld [vmem:[#allocation10 + $0x530] sm:$0xff] }
 0x124   : > { %2104 = vmatpush1.bf16.msra.mxu0 %v2530_v60  ;;  %2186 = vmatpush1.bf16.msra.mxu1 %v2532_v62  ;;  %v463_v60 = vld [vmem:[#allocation10 + $0x370] sm:$0xff]  ;;  %v460_v62 = vld [vmem:[#allocation10 + $0x358] sm:$0xff] }
 0x125   : > { %2105 = vmatprep.subr.bf16.mxu0 %v2539_v63  ;;  %2187 = vmatprep.subr.bf16.mxu1 %v2541_v0  ;;  %v464_v63 = vld [vmem:[#allocation10 + $0x378] sm:$0xff]  ;;  %v2594_v0 = vcombine.low %v451_v52, %v455_v53  ;;  %v2603_v2 = vcombine.high %v459_v59, %v463_v60 }
 0x126   : > { %v2605_v3 = vcombine.high %v460_v62, %v464_v63  ;;  %v2604_v9 = vcombine.low %v460_v62, %v464_v63  ;;  %v527_v62 = vld [vmem:[#allocation10 + $0x570] sm:$0xff]  ;;  %v524_v63 = vld [vmem:[#allocation10 + $0x558] sm:$0xff] }
 0x128   : > { %2106 = vmatpush1.bf16.msra.mxu0 %v2538_v5  ;;  %2188 = vmatpush1.bf16.msra.mxu1 %v2540_v6  ;;  %v471_v5 = vld [vmem:[#allocation10 + $0x3b0] sm:$0xff]  ;;  %v468_v6 = vld [vmem:[#allocation10 + $0x398] sm:$0xff] }
 0x129   : > { %2107 = vmatprep.subr.bf16.mxu0 %v2547_v7  ;;  %2189 = vmatprep.subr.bf16.mxu1 %v2549_v8  ;;  %v472_v7 = vld [vmem:[#allocation10 + $0x3b8] sm:$0xff]  ;;  %v2602_v8 = vcombine.low %v459_v59, %v463_v60  ;;  %v2611_v10 = vcombine.high %v467_v4, %v471_v5  ;;  %v2659_v59 = vcombine.high %v515_v54, %v519_v55  ;;  %v523_v60 = vld [vmem:[#allocation10 + $0x550] sm:$0xff] }
 0x12a   : > { %v2613_v11 = vcombine.high %v468_v6, %v472_v7  ;;  %v2612_v18 = vcombine.low %v468_v6, %v472_v7  ;;  %v535_v6 = vld [vmem:[#allocation10 + $0x5b0] sm:$0xff]  ;;  %v532_v7 = vld [vmem:[#allocation10 + $0x598] sm:$0xff] }
 0x12c   : > { %2108 = vmatpush1.bf16.msra.mxu0 %v2546_v13  ;;  %2190 = vmatpush1.bf16.msra.mxu1 %v2548_v14  ;;  %v479_v13 = vld [vmem:[#allocation10 + $0x3f0] sm:$0xff]  ;;  %v476_v14 = vld [vmem:[#allocation10 + $0x3d8] sm:$0xff] }
 0x12d   : > { %2109 = vmatprep.subr.bf16.mxu0 %v2555_v15  ;;  %2191 = vmatprep.subr.bf16.mxu1 %v2557_v17  ;;  %v480_v15 = vld [vmem:[#allocation10 + $0x3f8] sm:$0xff]  ;;  %v2610_v17 = vcombine.low %v467_v4, %v471_v5  ;;  %v2619_v19 = vcombine.high %v475_v12, %v479_v13  ;;  %v531_v5 = vld [vmem:[#allocation10 + $0x590] sm:$0xff] }
 0x12e   : > { %v2621_v20 = vcombine.high %v476_v14, %v480_v15  ;;  %v2620_v28 = vcombine.low %v476_v14, %v480_v15  ;;  %v543_v14 = vld [vmem:[#allocation10 + $0x5f0] sm:$0xff]  ;;  %v540_v15 = vld [vmem:[#allocation10 + $0x5d8] sm:$0xff] }
 0x130   : > { %2110 = vmatpush1.bf16.msra.mxu0 %v2554_v22  ;;  %2192 = vmatpush1.bf16.msra.mxu1 %v2556_v23  ;;  %v487_v22 = vld [vmem:[#allocation10 + $0x430] sm:$0xff]  ;;  %v484_v23 = vld [vmem:[#allocation10 + $0x418] sm:$0xff] }
 0x131   : > { %2111 = vmatprep.subr.bf16.mxu0 %v2563_v24  ;;  %2193 = vmatprep.subr.bf16.mxu1 %v2565_v27  ;;  %v488_v24 = vld [vmem:[#allocation10 + $0x438] sm:$0xff]  ;;  %v2618_v27 = vcombine.low %v475_v12, %v479_v13  ;;  %v2627_v29 = vcombine.high %v483_v21, %v487_v22  ;;  %v539_v13 = vld [vmem:[#allocation10 + $0x5d0] sm:$0xff] }
 0x132   : > { %v2629_v30 = vcombine.high %v484_v23, %v488_v24  ;;  %v2628_v36 = vcombine.low %v484_v23, %v488_v24  ;;  %v551_v23 = vld [vmem:[#allocation10 + $0x630] sm:$0xff]  ;;  %v548_v24 = vld [vmem:[#allocation10 + $0x618] sm:$0xff] }
 0x134   : > { %2112 = vmatpush1.bf16.msra.mxu0 %v2562_v32  ;;  %2194 = vmatpush1.bf16.msra.mxu1 %v2564_v33  ;;  %v495_v32 = vld [vmem:[#allocation10 + $0x470] sm:$0xff]  ;;  %v492_v33 = vld [vmem:[#allocation10 + $0x458] sm:$0xff] }
 0x135   : > { %2113 = vmatprep.subr.bf16.mxu0 %v2571_v34  ;;  %2195 = vmatprep.subr.bf16.mxu1 %v2573_v35  ;;  %v496_v34 = vld [vmem:[#allocation10 + $0x478] sm:$0xff]  ;;  %v2626_v35 = vcombine.low %v483_v21, %v487_v22  ;;  %v2635_v37 = vcombine.high %v491_v31, %v495_v32  ;;  %v547_v22 = vld [vmem:[#allocation10 + $0x610] sm:$0xff] }
 0x136   : > { %v2637_v38 = vcombine.high %v492_v33, %v496_v34  ;;  %v2636_v44 = vcombine.low %v492_v33, %v496_v34  ;;  %v559_v33 = vld [vmem:[#allocation10 + $0x670] sm:$0xff]  ;;  %v556_v34 = vld [vmem:[#allocation10 + $0x658] sm:$0xff] }
 0x138   : > { %2114 = vmatpush1.bf16.msra.mxu0 %v2570_v40  ;;  %2196 = vmatpush1.bf16.msra.mxu1 %v2572_v41  ;;  %v503_v40 = vld [vmem:[#allocation10 + $0x4b0] sm:$0xff]  ;;  %v500_v41 = vld [vmem:[#allocation10 + $0x498] sm:$0xff] }
 0x139   : > { %2115 = vmatprep.subr.bf16.mxu0 %v2579_v42  ;;  %2197 = vmatprep.subr.bf16.mxu1 %v2581_v43  ;;  %v504_v42 = vld [vmem:[#allocation10 + $0x4b8] sm:$0xff]  ;;  %v2634_v43 = vcombine.low %v491_v31, %v495_v32  ;;  %v2643_v45 = vcombine.high %v499_v39, %v503_v40  ;;  %v555_v32 = vld [vmem:[#allocation10 + $0x650] sm:$0xff] }
 0x13a   : > { %v2645_v46 = vcombine.high %v500_v41, %v504_v42 }
 0x13c   : > { %2116 = vmatpush1.bf16.msra.mxu0 %v2578_v48  ;;  %2198 = vmatpush1.bf16.msra.mxu1 %v2580_v49  ;;  %v511_v48 = vld [vmem:[#allocation10 + $0x4f0] sm:$0xff]  ;;  %v508_v49 = vld [vmem:[#allocation10 + $0x4d8] sm:$0xff] }
 0x13d   : > { %2117 = vmatprep.subr.bf16.mxu0 %v2587_v50  ;;  %2199 = vmatprep.subr.bf16.mxu1 %v2589_v51  ;;  %v512_v50 = vld [vmem:[#allocation10 + $0x4f8] sm:$0xff]  ;;  %v2642_v51 = vcombine.low %v499_v39, %v503_v40  ;;  %v2651_v52 = vcombine.high %v507_v47, %v511_v48  ;;  %v563_v40 = vld [vmem:[#allocation10 + $0x690] sm:$0xff] }
 0x13e   : > { %v2653_v53 = vcombine.high %v508_v49, %v512_v50 }
 0x140   : > { %2118 = vmatpush1.bf16.msra.mxu0 %v2586_v61  ;;  %2200 = vmatpush1.bf16.msra.mxu1 %v2588_v56  ;;  %v516_v61 = vld [vmem:[#allocation10 + $0x518] sm:$0xff] }
 0x141   : > { %2119 = vmatprep.subr.bf16.mxu0 %v2595_v57  ;;  %2201 = vmatprep.subr.bf16.mxu1 %v2597_v58  ;;  %v520_v56 = vld [vmem:[#allocation10 + $0x538] sm:$0xff]  ;;  %v2650_v57 = vcombine.low %v507_v47, %v511_v48  ;;  %v2652_v58 = vcombine.low %v508_v49, %v512_v50  ;;  %v571_v48 = vld [vmem:[#allocation10 + $0x6d0] sm:$0xff] }
 0x142   : > { %v575_v49 = vld [vmem:[#allocation10 + $0x6f0] sm:$0xff]  ;;  %v572_v50 = vld [vmem:[#allocation10 + $0x6d8] sm:$0xff] }
 0x144   : > { %2120 = vmatpush1.bf16.msra.mxu0 %v2594_v0  ;;  %2202 = vmatpush1.bf16.msra.mxu1 %v2596_v1  ;;  %v528_v0 = vld [vmem:[#allocation10 + $0x578] sm:$0xff]  ;;  %v2658_v1 = vcombine.low %v515_v54, %v519_v55  ;;  %v579_v55 = vld [vmem:[#allocation10 + $0x710] sm:$0xff] }
 0x145   : > { %2121 = vmatprep.subr.bf16.mxu0 %v2603_v2  ;;  %2203 = vmatprep.subr.bf16.mxu1 %v2605_v3  ;;  %v2660_v2 = vcombine.low %v516_v61, %v520_v56  ;;  %v2667_v3 = vcombine.high %v523_v60, %v527_v62  ;;  %v2669_v4 = vcombine.high %v524_v63, %v528_v0 }
 0x148   : > { %2122 = vmatpush1.bf16.msra.mxu0 %v2602_v8  ;;  %2204 = vmatpush1.bf16.msra.mxu1 %v2604_v9  ;;  %v536_v8 = vld [vmem:[#allocation10 + $0x5b8] sm:$0xff]  ;;  %v2666_v9 = vcombine.low %v523_v60, %v527_v62  ;;  %v587_v62 = vld [vmem:[#allocation10 + $0x750] sm:$0xff] }
 0x149   : > { %2123 = vmatprep.subr.bf16.mxu0 %v2611_v10  ;;  %2205 = vmatprep.subr.bf16.mxu1 %v2613_v11  ;;  %v2668_v10 = vcombine.low %v524_v63, %v528_v0  ;;  %v2675_v11 = vcombine.high %v531_v5, %v535_v6  ;;  %v2677_v12 = vcombine.high %v532_v7, %v536_v8  ;;  %v591_v63 = vld [vmem:[#allocation10 + $0x770] sm:$0xff]  ;;  %v588_v0 = vld [vmem:[#allocation10 + $0x758] sm:$0xff] }
 0x14c   : > { %2124 = vmatpush1.bf16.msra.mxu0 %v2610_v17  ;;  %2206 = vmatpush1.bf16.msra.mxu1 %v2612_v18  ;;  %v544_v17 = vld [vmem:[#allocation10 + $0x5f8] sm:$0xff]  ;;  %v2674_v18 = vcombine.low %v531_v5, %v535_v6  ;;  %v595_v6 = vld [vmem:[#allocation10 + $0x790] sm:$0xff] }
 0x14d   : > { %2125 = vmatprep.subr.bf16.mxu0 %v2619_v19  ;;  %2207 = vmatprep.subr.bf16.mxu1 %v2621_v20  ;;  %v2676_v19 = vcombine.low %v532_v7, %v536_v8  ;;  %v2683_v20 = vcombine.high %v539_v13, %v543_v14  ;;  %v2685_v21 = vcombine.high %v540_v15, %v544_v17  ;;  %v599_v7 = vld [vmem:[#allocation10 + $0x7b0] sm:$0xff]  ;;  %v596_v8 = vld [vmem:[#allocation10 + $0x798] sm:$0xff] }
 0x150   : > { %2126 = vmatpush1.bf16.msra.mxu0 %v2618_v27  ;;  %2208 = vmatpush1.bf16.msra.mxu1 %v2620_v28  ;;  %v552_v27 = vld [vmem:[#allocation10 + $0x638] sm:$0xff]  ;;  %v2682_v28 = vcombine.low %v539_v13, %v543_v14  ;;  %v603_v14 = vld [vmem:[#allocation10 + $0x7d0] sm:$0xff] }
 0x151   : > { %2136 = vmatprep.subr.bf16.mxu0 %v2627_v29  ;;  %2218 = vmatprep.subr.bf16.mxu1 %v2629_v30  ;;  %v2684_v29 = vcombine.low %v540_v15, %v544_v17  ;;  %v2691_v30 = vcombine.high %v547_v22, %v551_v23  ;;  %v2693_v31 = vcombine.high %v548_v24, %v552_v27  ;;  %v607_v15 = vld [vmem:[#allocation10 + $0x7f0] sm:$0xff]  ;;  %v604_v17 = vld [vmem:[#allocation10 + $0x7d8] sm:$0xff] }
 0x153   : > { %2128 = vmatmul.mubr.bf16.vlgmr.msra.gmra.mrb[4].mxu0 %v3427_v16  ;;  %2210 = vmatmul.mubr.bf16.vlgmr.msra.gmra.mrb[4].mxu1 %v3427_v16  ;;  %v2644_v16 = vcombine.low %v500_v41, %v504_v42  ;;  %v567_v41 = vld [vmem:[#allocation10 + $0x6b0] sm:$0xff]  ;;  %v564_v42 = vld [vmem:[#allocation10 + $0x698] sm:$0xff] }
 0x154   : > { %2137 = vmatpush1.bf16.msra.mxu0 %v2626_v35  ;;  %2219 = vmatpush1.bf16.msra.mxu1 %v2628_v36  ;;  %v560_v35 = vld [vmem:[#allocation10 + $0x678] sm:$0xff]  ;;  %v2690_v36 = vcombine.low %v547_v22, %v551_v23  ;;  %v2746_v23 = vcombine.low %v603_v14, %v607_v15 }
 0x155   : > { %2138 = vmatprep.subr.bf16.mxu0 %v2635_v37  ;;  %2220 = vmatprep.subr.bf16.mxu1 %v2637_v38  ;;  %v2692_v37 = vcombine.low %v548_v24, %v552_v27  ;;  %v2699_v38 = vcombine.high %v555_v32, %v559_v33  ;;  %v2701_v39 = vcombine.high %v556_v34, %v560_v35 }
 0x156   : > { %2168 = vmatprep.mubr.bf16.mxu0 %v3429_v26  ;;  %2250 = vmatprep.mubr.bf16.mxu1 %v3429_v26  ;;  %v2661_v26 = vcombine.high %v516_v61, %v520_v56  ;;  %v583_v61 = vld [vmem:[#allocation10 + $0x730] sm:$0xff]  ;;  %v580_v56 = vld [vmem:[#allocation10 + $0x718] sm:$0xff] }
 0x158   : > { %2139 = vmatpush1.bf16.msra.mxu0 %v2634_v43  ;;  %2221 = vmatpush1.bf16.msra.mxu1 %v2636_v44  ;;  %v568_v43 = vld [vmem:[#allocation10 + $0x6b8] sm:$0xff]  ;;  %v2698_v44 = vcombine.low %v555_v32, %v559_v33 }
 0x159   : > { %2140 = vmatprep.subr.bf16.mxu0 %v2643_v45  ;;  %2222 = vmatprep.subr.bf16.mxu1 %v2645_v46  ;;  %v2700_v45 = vcombine.low %v556_v34, %v560_v35  ;;  %v2707_v46 = vcombine.high %v563_v40, %v567_v41  ;;  %v2709_v47 = vcombine.high %v564_v42, %v568_v43  ;;  %v611_v35 = vlaneseq }
 0x15c   : > { %2141 = vmatpush1.bf16.msra.mxu0 %v2642_v51  ;;  %2223 = vmatpush1.bf16.msra.mxu1 %v2644_v16  ;;  %v576_v51 = vld [vmem:[#allocation10 + $0x6f8] sm:$0xff]  ;;  %v2706_v16 = vcombine.low %v563_v40, %v567_v41 }
 0x15d   : > { %2142 = vmatprep.subr.bf16.mxu0 %v2651_v52  ;;  %2224 = vmatprep.subr.bf16.mxu1 %v2653_v53  ;;  %v2708_v52 = vcombine.low %v564_v42, %v568_v43  ;;  %v2715_v53 = vcombine.high %v571_v48, %v575_v49  ;;  %v2717_v54 = vcombine.high %v572_v50, %v576_v51 }
 0x160   : > { %2143 = vmatpush1.bf16.msra.mxu0 %v2650_v57  ;;  %2225 = vmatpush1.bf16.msra.mxu1 %v2652_v58  ;;  %v584_v57 = vld [vmem:[#allocation10 + $0x738] sm:$0xff]  ;;  %v2714_v58 = vcombine.low %v571_v48, %v575_v49 }
 0x161   : > { %2144 = vmatprep.subr.bf16.mxu0 %v2659_v59  ;;  %2226 = vmatprep.subr.bf16.mxu1 %v2661_v26  ;;  %v2716_v59 = vcombine.low %v572_v50, %v576_v51  ;;  %v2723_v26 = vcombine.high %v579_v55, %v583_v61  ;;  %v2725_v60 = vcombine.high %v580_v56, %v584_v57 }
 0x164   : > { %2145 = vmatpush1.bf16.msra.mxu0 %v2658_v1  ;;  %2227 = vmatpush1.bf16.msra.mxu1 %v2660_v2  ;;  %v592_v1 = vld [vmem:[#allocation10 + $0x778] sm:$0xff]  ;;  %v2722_v2 = vcombine.low %v579_v55, %v583_v61 }
 0x165   : > { %2146 = vmatprep.subr.bf16.mxu0 %v2667_v3  ;;  %2228 = vmatprep.subr.bf16.mxu1 %v2669_v4  ;;  %v2724_v3 = vcombine.low %v580_v56, %v584_v57  ;;  %v2731_v4 = vcombine.high %v587_v62, %v591_v63  ;;  %v2733_v5 = vcombine.high %v588_v0, %v592_v1 }
 0x168   : > { %2147 = vmatpush1.bf16.msra.mxu0 %v2666_v9  ;;  %2229 = vmatpush1.bf16.msra.mxu1 %v2668_v10  ;;  %v600_v9 = vld [vmem:[#allocation10 + $0x7b8] sm:$0xff]  ;;  %v2730_v10 = vcombine.low %v587_v62, %v591_v63 }
 0x169   : > { %2148 = vmatprep.subr.bf16.mxu0 %v2675_v11  ;;  %2230 = vmatprep.subr.bf16.mxu1 %v2677_v12  ;;  %v2732_v11 = vcombine.low %v588_v0, %v592_v1  ;;  %v2739_v12 = vcombine.high %v595_v6, %v599_v7  ;;  %v2741_v13 = vcombine.high %v596_v8, %v600_v9 }
 0x16c   : > { %2149 = vmatpush1.bf16.msra.mxu0 %v2674_v18  ;;  %2231 = vmatpush1.bf16.msra.mxu1 %v2676_v19  ;;  %v608_v18 = vld [vmem:[#allocation10 + $0x7f8] sm:$0xff]  ;;  %v2738_v19 = vcombine.low %v595_v6, %v599_v7 }
 0x16d   : > { %2150 = vmatprep.subr.bf16.mxu0 %v2683_v20  ;;  %2232 = vmatprep.subr.bf16.mxu1 %v2685_v21  ;;  %v2740_v20 = vcombine.low %v596_v8, %v600_v9  ;;  %v2747_v21 = vcombine.high %v603_v14, %v607_v15  ;;  %v2749_v22 = vcombine.high %v604_v17, %v608_v18 }
 0x16e   : > { %v2748_v24 = vcombine.low %v604_v17, %v608_v18 }
 0x170   : > { %2151 = vmatpush1.bf16.msra.mxu0 %v2682_v28  ;;  %2233 = vmatpush1.bf16.msra.mxu1 %v2684_v29 }
 0x171   : > { %2152 = vmatprep.subr.bf16.mxu0 %v2691_v30  ;;  %2234 = vmatprep.subr.bf16.mxu1 %v2693_v31 }
 0x174   : > { %2153 = vmatpush1.bf16.msra.mxu0 %v2690_v36  ;;  %2235 = vmatpush1.bf16.msra.mxu1 %v2692_v37  ;;  %v612_v36 = vshrl.u32 %v611_v35, 7 }
 0x175   : > { %2154 = vmatprep.subr.bf16.mxu0 %v2699_v38  ;;  %2236 = vmatprep.subr.bf16.mxu1 %v2701_v39  ;;  %v609_v38 = vld [vmem:[%s3548_s4] sm:$0xff] }
 0x176   : > { %v613_v37 = vsub.s32 0, %v612_v36  ;;  %v621_v39 = vsub.s32 2, %v612_v36  ;;  %v617_v40 = vsub.s32 1, %v612_v36  ;;  %v625_v41 = vsub.s32 3, %v612_v36 }
 0x177   : > { %v637_v61 = vsub.s32 6, %v612_v36  ;;  %v633_v56 = vsub.s32 5, %v612_v36 }
 0x178   : > { %2155 = vmatpush1.bf16.msra.mxu0 %v2698_v44  ;;  %2237 = vmatpush1.bf16.msra.mxu1 %v2700_v45  ;;  %v614_v42 = vrot.slane %v609_v38, %v613_v37  ;;  %v618_v43 = vrot.slane %v609_v38, %v617_v40  ;;  %v626_v44 = vrot.slane %v609_v38, %v625_v41 }
 0x179   : > { %2156 = vmatprep.subr.bf16.mxu0 %v2707_v46  ;;  %2238 = vmatprep.subr.bf16.mxu1 %v2709_v47  ;;  %v638_v0 = vrot.slane %v609_v38, %v637_v61  ;;  %v634_v1 = vrot.slane %v609_v38, %v633_v56 }
 0x17c   : > { %2157 = vmatpush1.bf16.msra.mxu0 %v2706_v16  ;;  %2239 = vmatpush1.bf16.msra.mxu1 %v2708_v52 }
 0x17d   : > { %2158 = vmatprep.subr.bf16.mxu0 %v2715_v53  ;;  %2240 = vmatprep.subr.bf16.mxu1 %v2717_v54  ;;  %v629_v54 = vsub.s32 4, %v612_v36 }
 0x17f   : > { %v630_v62 = vrot.slane %v609_v38, %v629_v54 }
 0x180   : > { %2159 = vmatpush1.bf16.msra.mxu0 %v2714_v58  ;;  %2241 = vmatpush1.bf16.msra.mxu1 %v2716_v59  ;;  %v641_v59 = vsub.s32 7, %v612_v36 }
 0x181   : > { %2160 = vmatprep.subr.bf16.mxu0 %v2723_v26  ;;  %2242 = vmatprep.subr.bf16.mxu1 %v2725_v60 }
 0x184   : > { %2161 = vmatpush1.bf16.msra.mxu0 %v2722_v2  ;;  %2243 = vmatpush1.bf16.msra.mxu1 %v2724_v3  ;;  %v642_v2 = vrot.slane %v609_v38, %v641_v59 }
 0x185   : > { %2162 = vmatprep.subr.bf16.mxu0 %v2731_v4  ;;  %2244 = vmatprep.subr.bf16.mxu1 %v2733_v5 }
 0x188   : > { %2163 = vmatpush1.bf16.msra.mxu0 %v2730_v10  ;;  %2245 = vmatpush1.bf16.msra.mxu1 %v2732_v11 }
 0x189   : > { %2164 = vmatprep.subr.bf16.mxu0 %v2739_v12  ;;  %2246 = vmatprep.subr.bf16.mxu1 %v2741_v13 }
 0x18c   : > { %2165 = vmatpush1.bf16.msra.mxu0 %v2738_v19  ;;  %2247 = vmatpush1.bf16.msra.mxu1 %v2740_v20 }
 0x18d   : > { %2166 = vmatprep.subr.bf16.mxu0 %v2747_v21  ;;  %2248 = vmatprep.subr.bf16.mxu1 %v2749_v22  ;;  %v347_v21 = vld [vmem:[#allocation3] sm:$0xff] }
 0x190   : > { %2167 = vmatpush1.bf16.msra.mxu0 %v2746_v23  ;;  %2249 = vmatpush1.bf16.msra.mxu1 %v2748_v24  ;;  %v348_v23 = vld [vmem:[#allocation3 + $0x8] sm:$0xff] }
 0x193   : > { %2169 = vmatmul.mubr.bf16.vlgmr.msra.gmra.mrb[4].mxu0 %v3435_v25  ;;  %2251 = vmatmul.mubr.bf16.vlgmr.msra.gmra.mrb[4].mxu1 %v3435_v25  ;;  %v622_v25 = vrot.slane %v609_v38, %v621_v39 }
 0x1e6   : > { %v2006_v27 = vpop.f32.mrb[0].mxu0  ;;  %v2088_v28 = vpop.f32.mrb[0].mxu1 }
 0x1e7   : > { %v2008_v29 = vpop.f32.mrb[1].mxu0  ;;  %v2090_v30 = vpop.f32.mrb[1].mxu1  ;;  %v2768_v45 = vadd.f32 %v2006_v27, %v614_v42  ;;  %v2770_v46 = vadd.f32 %v2088_v28, %v622_v25 }
 0x1e8   : > { %v2010_v31 = vpop.f32.mrb[2].mxu0  ;;  %v2092_v32 = vpop.f32.mrb[2].mxu1  ;;  %v2769_v47 = vadd.f32 %v2008_v29, %v618_v43  ;;  %v2771_v48 = vadd.f32 %v2090_v30, %v626_v44 }
 0x1e9   : > { %v2011_v33 = vpop.f32.mrb[3].mxu0  ;;  %v2093_v34 = vpop.f32.mrb[3].mxu1  ;;  %v2750_v49 = vmul.f32 -1.442695, %v2768_v45  ;;  %v2752_v50 = vmul.f32 -1.442695, %v2770_v46 }
 0x1ea   : > { %v2751_v51 = vmul.f32 -1.442695, %v2769_v47  ;;  %v2753_v16 = vmul.f32 -1.442695, %v2771_v48 }
 0x1eb   : > { %2885 = vpow2.f32 %v2750_v49 }
 0x1ec   : > { %2887 = vpow2.f32 %v2752_v50 }
 0x1ed   : > { %2889 = vpow2.f32 %v2751_v51 }
 0x1ee   : > { %2891 = vpow2.f32 %v2753_v16 }
 0x1f5   : > { %v2886_v52 = vpop.eup %2885 }
 0x1f6   : > { %v2888_v53 = vpop.eup %2887  ;;  %v2265_v58 = vadd.f32 1.0, %v2886_v52 }
 0x1f7   : > { %v2890_v55 = vpop.eup %2889  ;;  %v2277_v26 = vadd.f32 1.0, %v2888_v53 }
 0x1f8   : > { %v2892_v57 = vpop.eup %2891  ;;  %v2266_v60 = vadd.f32 1.0, %v2890_v55  ;;  %2893 = vrcp.f32 %v2265_v58 }
 0x1f9   : > { %v2278_v63 = vadd.f32 1.0, %v2892_v57  ;;  %2895 = vrcp.f32 %v2277_v26 }
 0x1fa   : > { %2897 = vrcp.f32 %v2266_v60 }
 0x1fb   : > { %2899 = vrcp.f32 %v2278_v63 }
 0x202   : > { %v2894_v18 = vpop.eup %2893 }
 0x203   : > { %v2896_v19 = vpop.eup %2895 }
 0x204   : > { %v2898_v20 = vpop.eup %2897  ;;  %v2297_v28 = vmul.f32 %v2896_v19, %v347_v21 }
 0x205   : > { %v2900_v22 = vpop.eup %2899 }
 0x206   : > { %v2298_v30 = vmul.f32 %v2900_v22, %v348_v23 }
 0x266   : > { %v2170_v3 = vpop.f32.mrb[4].mxu0  ;;  %v2252_v5 = vpop.f32.mrb[4].mxu1 }
 0x267   : > { %v2772_v4 = vadd.f32 %v2170_v3, %v630_v62  ;;  %v2172_v6 = vpop.f32.mrb[5].mxu0  ;;  %v2774_v7 = vadd.f32 %v2252_v5, %v638_v0  ;;  %v2254_v9 = vpop.f32.mrb[5].mxu1 }
 0x268   : > { %v2773_v8 = vadd.f32 %v2172_v6, %v634_v1  ;;  %v2174_v10 = vpop.f32.mrb[6].mxu0  ;;  %v2775_v11 = vadd.f32 %v2254_v9, %v642_v2  ;;  %v2256_v12 = vpop.f32.mrb[6].mxu1 }
 0x269   : > { %2901 = vtanh.f32 %v2772_v4  ;;  %v2175_v13 = vpop.f32.mrb[7].mxu0  ;;  %v2754_v14 = vmul.f32 -1.442695, %v2774_v7  ;;  %v2257_v15 = vpop.f32.mrb[7].mxu1 }
 0x26a   : > { %2903 = vtanh.f32 %v2773_v8  ;;  %v2755_v17 = vmul.f32 -1.442695, %v2775_v11 }
 0x26b   : > { %2905 = vpow2.f32 %v2754_v14 }
 0x26c   : > { %2907 = vpow2.f32 %v2755_v17 }
 0x273   : > { %v2902_v24 = vpop.eup %2901 }
 0x274   : > { %v2904_v27 = vpop.eup %2903  ;;  %v2299_v29 = vmul.f32 %v2902_v24, %v2894_v18 }
 0x275   : > { %v2300_v31 = vmul.f32 %v2904_v27, %v2898_v20  ;;  %v2906_v32 = vpop.eup %2905 }
 0x276   : > { %v2301_v33 = vadd.f32 %v2299_v29, %v2297_v28  ;;  %v2908_v34 = vpop.eup %2907  ;;  %v2291_v35 = vadd.f32 1.0, %v2906_v32 }
 0x277   : > { %v2302_v36 = vadd.f32 %v2300_v31, %v2298_v30  ;;  %v2292_v37 = vadd.f32 1.0, %v2908_v34 }
 0x278   : > { %2909 = vtanh.f32 %v2301_v33  ;;  %2309 = vst [vmem:[#allocation3] sm:$0xff] %v2301_v33  ;;  %2319 = vst [vmem:[#allocation15] sm:$0xff] (!%p2756_p4), %v2301_v33 }
 0x279   : > { %2911 = vrcp.f32 %v2291_v35  ;;  %2310 = vst [vmem:[#allocation3 + $0x8] sm:$0xff] %v2302_v36  ;;  %2320 = vst [vmem:[#allocation15 + $0x8] sm:$0xff] (!%p2756_p4), %v2302_v36 }
 0x27a   : > { %2913 = vtanh.f32 %v2302_v36 }
 0x27b   : > { %2915 = vrcp.f32 %v2292_v37 }
 0x282   : > { %v2910_v38 = vpop.eup %2909  ;;  %2316 = sbr.rel (%p2756_p4) target bundleno = 650 (0x28a), region = 64 }
 0x283   : > { %v2912_v39 = vpop.eup %2911 }
 0x284   : > { %v2914_v40 = vpop.eup %2913  ;;  %v2305_v41 = vmul.f32 %v2912_v39, %v2910_v38 }
 0x285   : > { %v2916_v42 = vpop.eup %2915 }
 0x286   : > { %2307 = vst [vmem:[#allocation2] sm:$0xff] %v2305_v41  ;;  %2311 = vst [vmem:[%s3417_s9] sm:$0xff] %v2305_v41  ;;  %v2306_v25 = vmul.f32 %v2916_v42, %v2914_v40 }
 0x287   : > { %2317 = vst [vmem:[#allocation13] sm:$0xff] (!%p2756_p4), %v2305_v41 }
 0x288   : > { %2308 = vst [vmem:[#allocation2 + $0x8] sm:$0xff] %v2306_v25  ;;  %2312 = vst [vmem:[%s3417_s9 + $0x8] sm:$0xff] %v2306_v25 }
 0x289   : > { %2318 = vst [vmem:[#allocation13 + $0x8] sm:$0xff] %v2306_v25 }
 0x28a PF: > { %s3169_s22 = smov [#allocation13]   ;;  %s2767_s10 = sshll.u32 %s3233_s28, 8 }
 0x28b   : > { %s2347_s11 = sshll.u32 %s3169_s22, 4  ;;  %s3457_s17 = scalar_lea.hbm %s3549_s5, %s2767_s10  ;;  %s2348_s11 = int_to_ptr.vmem [resolvable:$true] %s2347_s11 }
 0x28c   : > { %s3031_s20 = scalar_lea.vmem %s2348_s11, 256  ;;  %p3570_p3 = scmp.eq.s32.totalorder %s3233_s28, 7 }
 0x28d   : > { %p3032_p9 = scmp.ne.s32.totalorder %s2348_s11, %s3031_s20  ;;  %p3038_p13 = scmp.lt.s32.totalorder %s2348_s11, %s2348_s11 }
 0x28e   : > { %p3039_p5 = scmp.lt.s32.totalorder %s3031_s20, %s3031_s20 }
 0x28f   : > { %p3033_p7 = pnand %p3032_p9, %p3570_p3 }
 0x290   : > { %p3040_p0 = por %p3039_p5, %p3038_p13 }
 0x291   : > { %p3034_p10 = pneg %p3033_p7 }
 0x293   : > { %p3041_p11 = pnand %p3040_p0, %p3034_p10 }
 0x295   : > { %3044 = shalt.err (!%p3041_p11)
}
 0x296   : > { %s3045_s23 = scalar_lea.hbm %s3550_s6, 256  ;;  %p3571_p12 = pmov %p3570_p3 }
 0x297   : > { %p3046_p8 = scmp.ne.s32.totalorder %s3550_s6, %s3045_s23  ;;  %p3051_p4 = scmp.lt.u32.totalorder %s3045_s23, %s3550_s6 }
 0x299   : > { %p3047_p2 = pnand %p3046_p8, %p3571_p12 }
 0x29b   : > { %p3048_p1 = pneg %p3047_p2 }
 0x29d   : > { %p3053_p9 = pnand %p3051_p4, %p3048_p1 }
 0x29f   : > { %3056 = shalt.err (!%p3053_p9)
}
 0x2a0   : > { %2808 = dma.vmem_to_hbm [thread:$0]  (%p3570_p3), %s2348_s11, 256, %s3550_s6, [#allocation14]  }
 0x2a1   : > { %s2336_s20 = sshll.u32 %s3417_s9, 4  ;;  %s3170_s16 = smov [#allocation15]   ;;  %s3478_s20 = int_to_ptr.vmem [resolvable:$true] %s2336_s20 }
 0x2a2   : > { %s3480_s21 = sshll.u32 %s3170_s16, 4  ;;  %s2322_s23 = scalar_lea.sflag [#allocation6], %s3399_s15  ;;  %s2359_s21 = int_to_ptr.vmem [resolvable:$true] %s3480_s21 }
 0x2a3   : > { %s3057_s30 = scalar_lea.vmem %s3478_s20, 256  ;;  %s3171_s13 = smov [#allocation12]  }
 0x2a4   : > { %p3058_p7 = scmp.ne.s32.totalorder %s3478_s20, %s3057_s30  ;;  %s3061_s22 = sshll.u32 %s3171_s13, 4  ;;  %s3062_s22 = int_to_ptr.vmem [resolvable:$false] %s3061_s22 }
 0x2a5   : > { %s3063_s10 = scalar_lea.vmem %s3062_s22, 512  ;;  %p3064_p5 = scmp.lt.s32.totalorder %s3478_s20, %s3062_s22 }
 0x2a6   : > { %p3059_p10 = pnand %p3058_p7, %p3354_p6  ;;  %p3065_p0 = scmp.lt.s32.totalorder %s3063_s10, %s3057_s30 }
 0x2a8   : > { %p3060_p13 = pneg %p3059_p10  ;;  %p3066_p11 = por %p3065_p0, %p3064_p5 }
 0x2aa   : > { %p3067_p8 = pnand %p3066_p11, %p3060_p13 }
 0x2ac   : > { %3070 = shalt.err (!%p3067_p8)
}
 0x2ad   : > { %s3071_s15 = scalar_lea.hbm %s3457_s17, 256  ;;  %s3075_s14 = scalar_lea.hbm %s3549_s5, 2048 }
 0x2ae   : > { %p3072_p12 = scmp.ne.s32.totalorder %s3457_s17, %s3071_s15  ;;  %p3076_p4 = scmp.lt.u32.totalorder %s3457_s17, %s3549_s5 }
 0x2af   : > { %p3077_p9 = scmp.lt.u32.totalorder %s3075_s14, %s3071_s15  ;;  %p3079_p7 = scmp.lt.u32.totalorder %s3071_s15, %s3457_s17 }
 0x2b0   : > { %p3073_p2 = pnand %p3072_p12, %p3354_p6 }
 0x2b1   : > { %p3078_p3 = por %p3077_p9, %p3076_p4 }
 0x2b2   : > { %p3074_p1 = pneg %p3073_p2 }
 0x2b3   : > { %p3080_p10 = por %p3079_p7, %p3078_p3 }
 0x2b5   : > { %p3081_p13 = pnand %p3080_p10, %p3074_p1 }
 0x2b7   : > { %3084 = shalt.err (!%p3081_p13)
}
 0x2b8   : > { %2806 = dma.vmem_to_hbm [thread:$0]  (%p3354_p6), %s3478_s20, 256, %s3457_s17, %s2322_s23  }
 0x2b9   : > { %s3085_s30 = scalar_lea.vmem %s2359_s21, 256  ;;  %p3572_p0 = scmp.eq.s32.totalorder %s3233_s28, 7 }
 0x2ba   : > { %p3086_p5 = scmp.ne.s32.totalorder %s2359_s21, %s3085_s30  ;;  %p3092_p12 = scmp.lt.s32.totalorder %s2359_s21, %s2359_s21 }
 0x2bb   : > { %p3093_p2 = scmp.lt.s32.totalorder %s3085_s30, %s3085_s30 }
 0x2bc   : > { %p3087_p11 = pnand %p3086_p5, %p3572_p0 }
 0x2bd   : > { %p3094_p4 = por %p3093_p2, %p3092_p12 }
 0x2be   : > { %p3088_p8 = pneg %p3087_p11 }
 0x2c0   : > { %p3095_p9 = pnand %p3094_p4, %p3088_p8 }
 0x2c2   : > { %3098 = shalt.err (!%p3095_p9)
}
 0x2c3   : > { %s3099_s19 = scalar_lea.hbm %s3551_s7, 256  ;;  %p3573_p1 = pmov %p3572_p0 }
 0x2c4   : > { %p3100_p6 = scmp.ne.s32.totalorder %s3551_s7, %s3099_s19  ;;  %p3105_p10 = scmp.lt.u32.totalorder %s3099_s19, %s3551_s7 }
 0x2c6   : > { %p3101_p3 = pnand %p3100_p6, %p3573_p1 }
 0x2c8   : > { %p3102_p7 = pneg %p3101_p3 }
 0x2ca   : > { %p3107_p13 = pnand %p3105_p10, %p3102_p7 }
 0x2cc   : > { %3110 = shalt.err (!%p3107_p13)
}
 0x2cd   : > { %p3574_p5 = pmov %p3572_p0 }
 0x2cf   : > { %2810 = dma.vmem_to_hbm [thread:$0]  (%p3574_p5), %s2359_s21, 256, %s3551_s7, [#allocation14]  }
 0x2d0   : > { %3140 = dma.done.wait (%p3572_p0), [#allocation14], 512   ;;  %p3575_p11 = pmov %p3572_p0 }
 0x2d2   : > { %3142 = vsyncadd (%p3575_p11), [#allocation14], 4294966784 }
 0x2d3 PF: > { %p2845_p8 = scmp.ge.s32.totalorder %s3161_s27, 2  ;;  %s2378_s11 = sand.u32 1, %s3149_s24  }
 0x2d4   : > { %p3576_p12 = scmp.ne.s32.totalorder %s3556_s8, 0  ;;  %s2379_s14 = scalar_lea.sflag [#allocation6], %s2378_s11 }
 0x2d6   : > { %p2831_p2 = pnand %p2845_p8, %p3576_p12 }
 0x2d8   : > { %3144 = dma.done.wait (!%p2831_p2), %s2379_s14, 256  }
 0x2d9   : > { %3146 = vsyncadd (!%p2831_p2), %s2379_s14, 4294967040  ;;  %p24_p4 = scmp.ge.s32.totalorder %s3340_s12, 10   ;;  %s3577_s24 = smov %s3153_s25 }
 0x2da   : > { %s3578_s25 = smov %s3157_s26  ;;  %s3579_s26 = smov %s3350_s18 }
 0x2db   : > { %s3580_s27 = smov %s3340_s12  ;;  %26 = sbr.rel (!%p24_p4) target bundleno = 8 (0x8), region = 121 }
 0x2e2   :  { %2384 = vsyncpa [#allocation5], 1 }
 0x2e3   :  { %2386 = vsyncpa [#allocation5 + $0x1], 1 }
 0x2e4   :  { %2387 = vsyncpa [#allocation8], 1 }
 0x2e5   :  { %2388 = vsyncpa [#allocation11], 1 }
 0x2e6   :  { %2389 = vsyncpa [#allocation6], 1 }
 0x2e7   :  { %2391 = vsyncpa [#allocation6 + $0x1], 1 }
 0x2e8   :  { %2392 = vsyncpa [#allocation14], 1 }

</bundles_post_ra>
